<compile_context>
chip_gen: v7x
topology: tpu7x:2x2x1
jax: 0.10.0
libtpu: 0.0.40
codegen_flags: <defaults>
</compile_context>

<pallas_src>
import math
from functools import partial

import jax
import jax.numpy as jnp
import numpy as np
from jax.experimental import pallas as pl
from jax.experimental.pallas import tpu as pltpu

_LN_EPS = 1e-5  # torch.nn.LayerNorm default eps


def _erf_f32(x):
    """float32 erf (Eigen/XLA-style rational polynomial), mul/add/div only."""
    x = jnp.clip(x, -4.0, 4.0)
    x2 = x * x
    p = jnp.float32(-2.72614225801306e-10)
    for c in (2.77068142495902e-08, -2.10102402082508e-06, -5.69250639462346e-05,
              -7.34990630326855e-04, -2.95459980854025e-03, -1.60960333262415e-02):
        p = p * x2 + jnp.float32(c)
    p = p * x
    q = jnp.float32(-1.45660718464996e-05)
    for c in (-2.13374055278905e-04, -1.68282697438203e-03, -7.37332916720468e-03,
              -1.42647390514189e-02):
        q = q * x2 + jnp.float32(c)
    return p / q


def _gelu_exact(x):
    # Matches torch.nn.GELU() (erf based), float32 VPU math.
    # TODO(synk): a tanh-based GELU would run on the otherwise idle EUP slot on
    # v6e/v7x; kept erf-based for parity with the PyTorch module.
    return 0.5 * x * (1.0 + _erf_f32(x * jnp.float32(1.0 / math.sqrt(2.0))))


def _layer_norm(x, w, b):
    mu = jnp.mean(x, axis=-1, keepdims=True)
    var = jnp.mean((x - mu) ** 2, axis=-1, keepdims=True)
    return (x - mu) * jax.lax.rsqrt(var + jnp.float32(_LN_EPS)) * w + b


def _const_spec(shape, single_buffer=True):
    """Whole-array constant-index operand (weights / biases).

    Constant index_map => same block every grid step, so the second pipeline
    buffer is pure VMEM waste; request single-buffering via pl.Buffered(1)."""
    nd = len(shape)
    idx = lambda *_: (0,) * nd
    if single_buffer:
        try:
            return pl.BlockSpec(shape, idx, pipeline_mode=pl.Buffered(1))
        except (TypeError, AttributeError):   # older jax: no pipeline_mode
            pass
    return pl.BlockSpec(shape, idx)


def _padded_bytes(shape, dtype):
    """VMEM footprint of one buffer of `shape` with (8, 128) tile padding."""
    s = list(shape)
    if len(s) >= 1:
        s[-1] = -(-s[-1] // 128) * 128
    if len(s) >= 2:
        s[-2] = -(-s[-2] // 8) * 8
    return int(np.prod(s)) * np.dtype(dtype).itemsize


def _vmem_limit(nbytes):
    # ~50% headroom over the estimated footprint; floored at 32 MiB (>= the
    # default scoped limit on all generations), capped below physical VMEM.
    return int(min(max(32 * 2 ** 20, (nbytes * 3) // 2), 96 * 2 ** 20))


# --------------------------------------------------------------------------
# Kernel 1: LayerNorm1 + fused QKV projection (one full-width matmul),
#           head-major q/k/v outputs.
# --------------------------------------------------------------------------
def _qkv_proj_kernel(x_ref, n1w_ref, n1b_ref, wqkv_ref, bqkv_ref,
                     q_ref, k_ref, v_ref, *, num_heads, head_dim):
    C = num_heads * head_dim
    x = x_ref[0].astype(jnp.float32)                      # (tn, C)
    xn = _layer_norm(x, n1w_ref[...], n1b_ref[...])       # float32 LN
    xn_mm = xn.astype(wqkv_ref.dtype)                     # bf16 (or f32) into MXU
    # ONE fused (tn, C) x (C, 3C) matmul: full MXU lane width, single result
    # drain.  The attention scale is pre-folded into the q columns/bias.
    qkv = jnp.dot(xn_mm, wqkv_ref[...], preferred_element_type=jnp.float32)
    qkv = (qkv + bqkv_ref[...]).astype(q_ref.dtype)       # (tn, 3C)
    # Split head-major with static lane slices (no extra matmuls).  `qkv` must
    # stay live across all stores, so a static loop does not inflate live set.
    for h in range(num_heads):
        q_ref[0, h] = qkv[:, h * head_dim:(h + 1) * head_dim]
        k_ref[0, h] = qkv[:, C + h * head_dim:C + (h + 1) * head_dim]
        v_ref[0, h] = qkv[:, 2 * C + h * head_dim:2 * C + (h + 1) * head_dim]


# --------------------------------------------------------------------------
# Kernel 2: flash attention (online softmax over KV tiles) + full-depth output
#           projection + residual + LayerNorm2 + MLP(GELU) + residual.
# --------------------------------------------------------------------------
def _flash_mlp_kernel(x_ref, q_ref, k_ref, v_ref, wproj_ref, bproj_ref,
                      n2w_ref, n2b_ref, wfc1_ref, bfc1_ref, wfc2_ref, bfc2_ref,
                      o_ref, m_sc, l_sc, acc_sc, *, num_heads, exp_dtype):
    kv = pl.program_id(2)

    @pl.when(kv == 0)
    def _init():
        m_sc[...] = jnp.full(m_sc.shape, -jnp.inf, dtype=m_sc.dtype)
        l_sc[...] = jnp.zeros(l_sc.shape, dtype=l_sc.dtype)
        acc_sc[...] = jnp.zeros(acc_sc.shape, dtype=acc_sc.dtype)

    q = q_ref[0]                                          # (H, tq, hd)
    k = k_ref[0]                                          # (H, tk, hd)
    v = v_ref[0]                                          # (H, tk, hd)

    s = jnp.einsum("hqd,hkd->hqk", q, k,
                   preferred_element_type=jnp.float32)    # (H, tq, tk) f32
    m_prev = m_sc[...]
    m_new = jnp.maximum(m_prev, jnp.max(s, axis=-1, keepdims=True))
    if np.dtype(exp_dtype) == np.dtype(np.float32):
        alpha = jnp.exp(m_prev - m_new)
        p = jnp.exp(s - m_new)
    else:
        # bf16 exp on v6e/v7x: 2x EUP throughput, half the (H, tq, tk) live
        # temporary; max / l / acc bookkeeping stays float32.
        alpha = jnp.exp((m_prev - m_new).astype(exp_dtype)).astype(jnp.float32)
        p = jnp.exp((s - m_new).astype(exp_dtype)).astype(jnp.float32)
    l_sc[...] = alpha * l_sc[...] + jnp.sum(p, axis=-1, keepdims=True)
    acc_sc[...] = alpha * acc_sc[...] + jnp.einsum(
        "hqk,hkd->hqd", p.astype(v.dtype), v, preferred_element_type=jnp.float32)
    m_sc[...] = m_new

    @pl.when(kv == pl.num_programs(2) - 1)
    def _epilogue():
        mm_dtype = wproj_ref.dtype
        exact = np.dtype(mm_dtype) == np.dtype(np.float32)
        inv_l = (1.0 / l_sc[...]) if exact else pl.reciprocal(l_sc[...], approx=True)
        attn = acc_sc[...] * inv_l                        # (H, tq, hd) f32
        # Lane-concatenate heads -> (tq, C); ONE full contraction-depth
        # projection matmul instead of num_heads dots with K=hd.
        attn_cat = jnp.concatenate([attn[h] for h in range(num_heads)], axis=-1)
        out_attn = jnp.dot(attn_cat.astype(mm_dtype), wproj_ref[...],
                           preferred_element_type=jnp.float32) + bproj_ref[...]

        x1 = x_ref[0].astype(jnp.float32) + out_attn      # residual 1
        xn2 = _layer_norm(x1, n2w_ref[...], n2b_ref[...])
        h1 = jnp.dot(xn2.astype(mm_dtype), wfc1_ref[...],
                     preferred_element_type=jnp.float32) + bfc1_ref[...]
        h1 = _gelu_exact(h1)                              # float32 GELU
        h2 = jnp.dot(h1.astype(mm_dtype), wfc2_ref[...],
                     preferred_element_type=jnp.float32) + bfc2_ref[...]
        o_ref[0] = (x1 + h2).astype(o_ref.dtype)          # residual 2


# --------------------------------------------------------------------------
# Host-side (one-time) parameter preparation + wrapper
# --------------------------------------------------------------------------
def prepare_block_params(params, *, num_heads, matmul_dtype=jnp.bfloat16):
    """One-time host transform of module params into kernel-ready layout.

    * qkv weight stays a single (C, 3C) matrix (fused full-width matmul); the
      attention scale is folded into the q columns AND the q bias (the module
      scales q after bias).
    * proj / fc weights stay full matrices (full contraction-depth matmuls).
    * MXU operands cast to `matmul_dtype`; biases / LN params stay float32.
    """
    C = params["w_qkv"].shape[0]
    hd = C // num_heads
    hidden = params["w_fc1"].shape[1]
    scale = float(hd) ** -0.5

    col_scale = jnp.concatenate(
        [jnp.full((C,), scale, jnp.float32), jnp.ones((2 * C,), jnp.float32)])
    w_qkv = jnp.asarray(params["w_qkv"], jnp.float32) * col_scale[None, :]
    b_qkv = jnp.asarray(params["b_qkv"], jnp.float32).reshape(3 * C) * col_scale

    return {
        "num_heads": int(num_heads),
        "n1_w": params["n1_w"].reshape(1, C).astype(jnp.float32),
        "n1_b": params["n1_b"].reshape(1, C).astype(jnp.float32),
        "w_qkv": w_qkv.astype(matmul_dtype),               # (C, 3C)
        "b_qkv": b_qkv.reshape(1, 3 * C),                  # float32
        "w_proj": params["w_proj"].astype(matmul_dtype),   # (C, C)
        "b_proj": params["b_proj"].reshape(1, C).astype(jnp.float32),
        "n2_w": params["n2_w"].reshape(1, C).astype(jnp.float32),
        "n2_b": params["n2_b"].reshape(1, C).astype(jnp.float32),
        "w_fc1": params["w_fc1"].astype(matmul_dtype),     # (C, hidden)
        "b_fc1": params["b_fc1"].reshape(1, hidden).astype(jnp.float32),
        "w_fc2": params["w_fc2"].astype(matmul_dtype),     # (hidden, C)
        "b_fc2": params["b_fc2"].reshape(1, C).astype(jnp.float32),
    }


def vit_block_forward(x, prepped, *, tq=None, tk=None, tn=None,
                      softmax_exp_dtype=jnp.float32, single_buffer_weights=True):
    B, Hi, Wi, C = x.shape
    N = Hi * Wi
    num_heads = int(prepped["num_heads"])
    hd = C // num_heads
    hidden = prepped["w_fc1"].shape[1]
    mm_dtype = prepped["w_qkv"].dtype

    # Default tiles sized for v7x's 64 MiB VMEM; on 128 MiB parts (v5e/v6e)
    # callers may raise tq/tn (e.g. tq=512, tn=1024) -- vmem_limit_bytes below
    # is derived from the actual footprint either way.
    if tn is None:
        tn = min(N, 512)
    if tq is None:
        tq = min(N, 256)
    if tk is None:
        tk = min(N, 512)
    assert N % tn == 0 and N % tq == 0 and N % tk == 0, "tiles must divide N=H*W"

    x2 = x.reshape(B, N, C)           # native dtype; cast to f32 inside kernels
    cs = partial(_const_spec, single_buffer=single_buffer_weights)
    wbuf = 1 if single_buffer_weights else 2

    # ---- VMEM budgets (lane/sublane padded, incl. pipeline buffers) ----
    k1_vmem = (2 * _padded_bytes((1, tn, C), x.dtype)                        # x
               + wbuf * 2 * _padded_bytes((1, C), jnp.float32)               # ln1
               + wbuf * _padded_bytes((C, 3 * C), mm_dtype)                  # w_qkv
               + wbuf * _padded_bytes((1, 3 * C), jnp.float32)               # b_qkv
               + 3 * 2 * _padded_bytes((1, num_heads, tn, hd), mm_dtype))    # q/k/v
    k2_vmem = (2 * _padded_bytes((1, tq, C), x.dtype)                        # shortcut
               + 2 * _padded_bytes((1, num_heads, tq, hd), mm_dtype)         # q
               + 4 * _padded_bytes((1, num_heads, tk, hd), mm_dtype)         # k, v
               + wbuf * (_padded_bytes((C, C), mm_dtype)
                         + _padded_bytes((C, hidden), mm_dtype)
                         + _padded_bytes((hidden, C), mm_dtype)
                         + 4 * _padded_bytes((1, C), jnp.float32)
                         + _padded_bytes((1, hidden), jnp.float32))
               + 2 * _padded_bytes((1, tq, C), x.dtype)                      # out
               + 2 * _padded_bytes((num_heads, tq, 1), jnp.float32)          # m, l
               + _padded_bytes((num_heads, tq, hd), jnp.float32))            # acc

    # ---- kernel 1: LN1 + fused QKV projection (head-major q/k/v) ----
    qkv_shape = jax.ShapeDtypeStruct((B, num_heads, N, hd), mm_dtype)
    q_hm, k_hm, v_hm = pl.pallas_call(
        partial(_qkv_proj_kernel, num_heads=num_heads, head_dim=hd),
        out_shape=(qkv_shape, qkv_shape, qkv_shape),
        grid_spec=pltpu.PrefetchScalarGridSpec(
            num_scalar_prefetch=0,
            grid=(B, N // tn),
            in_specs=[
                pl.BlockSpec((1, tn, C), lambda b, i: (b, i, 0)),
                cs((1, C)), cs((1, C)),
                cs((C, 3 * C)), cs((1, 3 * C)),
            ],
            out_specs=tuple(
                pl.BlockSpec((1, num_heads, tn, hd), lambda b, i: (b, 0, i, 0))
                for _ in range(3)),
        ),
        compiler_params=pltpu.CompilerParams(
            dimension_semantics=("parallel", "parallel"),
            vmem_limit_bytes=_vmem_limit(k1_vmem)),
    )(x2, prepped["n1_w"], prepped["n1_b"], prepped["w_qkv"], prepped["b_qkv"])

    # ---- kernel 2: flash attention + proj + residual + LN2 + MLP ----
    out = pl.pallas_call(
        partial(_flash_mlp_kernel, num_heads=num_heads, exp_dtype=softmax_exp_dtype),
        out_shape=jax.ShapeDtypeStruct((B, N, C), x.dtype),
        grid_spec=pltpu.PrefetchScalarGridSpec(
            num_scalar_prefetch=0,
            grid=(B, N // tq, N // tk),
            in_specs=[
                pl.BlockSpec((1, tq, C), lambda b, qi, ki: (b, qi, 0)),                 # shortcut x
                pl.BlockSpec((1, num_heads, tq, hd), lambda b, qi, ki: (b, 0, qi, 0)),  # q
                pl.BlockSpec((1, num_heads, tk, hd), lambda b, qi, ki: (b, 0, ki, 0)),  # k
                pl.BlockSpec((1, num_heads, tk, hd), lambda b, qi, ki: (b, 0, ki, 0)),  # v
                cs((C, C)), cs((1, C)),                                                 # proj
                cs((1, C)), cs((1, C)),                                                 # norm2
                cs((C, hidden)), cs((1, hidden)),                                       # fc1
                cs((hidden, C)), cs((1, C)),                                            # fc2
            ],
            out_specs=pl.BlockSpec((1, tq, C), lambda b, qi, ki: (b, qi, 0)),
            scratch_shapes=[
                pltpu.VMEM((num_heads, tq, 1), jnp.float32),   # running row max
                pltpu.VMEM((num_heads, tq, 1), jnp.float32),   # running denominator
                pltpu.VMEM((num_heads, tq, hd), jnp.float32),  # output accumulator
            ],
        ),
        compiler_params=pltpu.CompilerParams(
            dimension_semantics=("parallel", "parallel", "arbitrary"),
            vmem_limit_bytes=_vmem_limit(k2_vmem)),
    )(x2, q_hm, k_hm, v_hm,
      prepped["w_proj"], prepped["b_proj"], prepped["n2_w"], prepped["n2_b"],
      prepped["w_fc1"], prepped["b_fc1"], prepped["w_fc2"], prepped["b_fc2"])
    return out.reshape(B, Hi, Wi, C)


# --------------------------------------------------------------------------
# Pure-JAX reference (mirrors the PyTorch Block.forward with default flags)
# --------------------------------------------------------------------------
def reference_forward(x, params, *, num_heads):
    B, Hi, Wi, C = x.shape
    N = Hi * Wi
    hd = C // num_heads
    scale = hd ** (-0.5)
    xf = x.reshape(B, N, C)

    def ln(v, w, b):
        mu = v.mean(-1, keepdims=True)
        var = ((v - mu) ** 2).mean(-1, keepdims=True)
        return (v - mu) / jnp.sqrt(var + _LN_EPS) * w + b

    shortcut = xf
    xn = ln(xf, params["n1_w"], params["n1_b"])
    qkv = xn @ params["w_qkv"] + params["b_qkv"]
    q, k, v = qkv[..., :C], qkv[..., C:2 * C], qkv[..., 2 * C:]
    q = q.reshape(B, N, num_heads, hd).transpose(0, 2, 1, 3) * scale
    k = k.reshape(B, N, num_heads, hd).transpose(0, 2, 1, 3)
    v = v.reshape(B, N, num_heads, hd).transpose(0, 2, 1, 3)
    s = jnp.einsum("bhqd,bhkd->bhqk", q, k)
    p = jax.nn.softmax(s, axis=-1)
    o = jnp.einsum("bhqk,bhkd->bhqd", p, v).transpose(0, 2, 1, 3).reshape(B, N, C)
    o = o @ params["w_proj"] + params["b_proj"]
    x1 = shortcut + o
    xn2 = ln(x1, params["n2_w"], params["n2_b"])
    h1 = _gelu_exact(xn2 @ params["w_fc1"] + params["b_fc1"])
    h2 = h1 @ params["w_fc2"] + params["b_fc2"]
    return (x1 + h2).reshape(B, Hi, Wi, C)


if __name__ == "__main__":
    key = jax.random.PRNGKey(0)
    B, H, W = 2, 8, 8
    dim, num_heads, mlp_ratio = 32, 4, 4.0
    hidden = int(dim * mlp_ratio)
    ks = jax.random.split(key, 9)

    params = {
        "n1_w": jnp.ones((dim,), jnp.float32),            # LayerNorm init: weight=1
        "n1_b": jnp.zeros((dim,), jnp.float32),           # bias=0
        "w_qkv": 0.05 * jax.random.normal(ks[0], (dim, 3 * dim), jnp.float32),
        "b_qkv": 0.05 * jax.random.normal(ks[1], (3 * dim,), jnp.float32),
        "w_proj": 0.05 * jax.random.normal(ks[2], (dim, dim), jnp.float32),
        "b_proj": 0.05 * jax.random.normal(ks[3], (dim,), jnp.float32),
        "n2_w": jnp.ones((dim,), jnp.float32),
        "n2_b": jnp.zeros((dim,), jnp.float32),
        "w_fc1": 0.05 * jax.random.normal(ks[4], (dim, hidden), jnp.float32),
        "b_fc1": 0.05 * jax.random.normal(ks[5], (hidden,), jnp.float32),
        "w_fc2": 0.05 * jax.random.normal(ks[6], (hidden, dim), jnp.float32),
        "b_fc2": 0.05 * jax.random.normal(ks[7], (dim,), jnp.float32),
    }
    x = jax.random.normal(ks[8], (B, H, W, dim), jnp.float32)

    ref = jax.block_until_ready(reference_forward(x, params, num_heads=num_heads))

    def run(pp, **kw):
        try:
            return jax.block_until_ready(vit_block_forward(x, pp, **kw))
        except Exception:
            # Fallback for jax versions where pl.Buffered(1) single-buffering
            # is not supported by the TPU grid pipeline.
            return jax.block_until_ready(
                vit_block_forward(x, pp, single_buffer_weights=False, **kw))

    # Tight numerical validation: float32 MXU operands, exact reciprocal, small
    # tiles so the multi-q-tile / multi-kv-tile online-softmax path is exercised.
    pp_f32 = prepare_block_params(params, num_heads=num_heads, matmul_dtype=jnp.float32)
    out_f32 = run(pp_f32, tq=32, tk=32, tn=32)
    np.testing.assert_allclose(np.asarray(out_f32), np.asarray(ref), rtol=2e-3, atol=2e-3)

    # Performance configuration: bfloat16 MXU operands, float32 accumulation.
    pp_bf16 = prepare_block_params(params, num_heads=num_heads, matmul_dtype=jnp.bfloat16)
    out_bf16 = run(pp_bf16, tq=32, tk=32, tn=32)
    np.testing.assert_allclose(np.asarray(out_bf16), np.asarray(ref), rtol=2e-2, atol=2e-2)

    print("KERNEL_OK")
</pallas_src>

<mosaic_0001>
module attributes {stable_mosaic.version = 11 : i64} {
  func.func @_qkv_proj_kernel(%arg0: i32, %arg1: i32, %arg2: memref<1x32x32xf32, #tpu.memory_space<vmem>>, %arg3: memref<1x32xf32, #tpu.memory_space<vmem>>, %arg4: memref<1x32xf32, #tpu.memory_space<vmem>>, %arg5: memref<32x96xf32, #tpu.memory_space<vmem>>, %arg6: memref<1x96xf32, #tpu.memory_space<vmem>>, %arg7: memref<1x4x32x8xf32, #tpu.memory_space<vmem>>, %arg8: memref<1x4x32x8xf32, #tpu.memory_space<vmem>>, %arg9: memref<1x4x32x8xf32, #tpu.memory_space<vmem>>) attributes {dimension_semantics = [#tpu.dimension_semantics<parallel>, #tpu.dimension_semantics<parallel>], iteration_bounds = array<i64: 2, 2>, scalar_prefetch = 0 : i64, scratch_operands = 0 : i64, tpu.core_type = #tpu.core_type<tc>, window_params = [{transform_indices = @transform_0, window_bounds = array<i64: 1, 32, 32>}, {pipeline_mode = #tpu.pipeline_mode<synchronous>, transform_indices = @transform_1, window_bounds = array<i64: 1, 32>}, {pipeline_mode = #tpu.pipeline_mode<synchronous>, transform_indices = @transform_2, window_bounds = array<i64: 1, 32>}, {pipeline_mode = #tpu.pipeline_mode<synchronous>, transform_indices = @transform_3, window_bounds = array<i64: 32, 96>}, {pipeline_mode = #tpu.pipeline_mode<synchronous>, transform_indices = @transform_4, window_bounds = array<i64: 1, 96>}, {transform_indices = @transform_5, window_bounds = array<i64: 1, 4, 32, 8>}, {transform_indices = @transform_6, window_bounds = array<i64: 1, 4, 32, 8>}, {transform_indices = @transform_7, window_bounds = array<i64: 1, 4, 32, 8>}]} {
    %c0 = arith.constant 0 : index
    %c0_0 = arith.constant 0 : index
    %c0_1 = arith.constant 0 : index
    %0 = vector.load %arg2[%c0, %c0_0, %c0_1] : memref<1x32x32xf32, #tpu.memory_space<vmem>>, vector<1x32x32xf32>
    %1 = vector.shape_cast %0 : vector<1x32x32xf32> to vector<32x32xf32>
    %c0_2 = arith.constant 0 : index
    %c0_3 = arith.constant 0 : index
    %2 = vector.load %arg3[%c0_2, %c0_3] : memref<1x32xf32, #tpu.memory_space<vmem>>, vector<1x32xf32>
    %c0_4 = arith.constant 0 : index
    %c0_5 = arith.constant 0 : index
    %3 = vector.load %arg4[%c0_4, %c0_5] : memref<1x32xf32, #tpu.memory_space<vmem>>, vector<1x32xf32>
    %cst = arith.constant dense<0.000000e+00> : vector<32xf32>
    %4 = vector.multi_reduction <add>, %1, %cst [1] : vector<32x32xf32> to vector<32xf32>
    %5 = vector.shape_cast %4 : vector<32xf32> to vector<32x1xf32>
    %cst_6 = arith.constant 3.200000e+01 : f32
    %6 = vector.broadcast %cst_6 : f32 to vector<32x1xf32>
    %7 = arith.divf %5, %6 : vector<32x1xf32>
    %8 = vector.broadcast %7 : vector<32x1xf32> to vector<32x32xf32>
    %9 = arith.subf %1, %8 : vector<32x32xf32>
    %10 = arith.mulf %9, %9 : vector<32x32xf32>
    %cst_7 = arith.constant dense<0.000000e+00> : vector<32xf32>
    %11 = vector.multi_reduction <add>, %10, %cst_7 [1] : vector<32x32xf32> to vector<32xf32>
    %12 = vector.shape_cast %11 : vector<32xf32> to vector<32x1xf32>
    %cst_8 = arith.constant 3.200000e+01 : f32
    %13 = vector.broadcast %cst_8 : f32 to vector<32x1xf32>
    %14 = arith.divf %12, %13 : vector<32x1xf32>
    %15 = vector.broadcast %7 : vector<32x1xf32> to vector<32x32xf32>
    %16 = arith.subf %1, %15 : vector<32x32xf32>
    %cst_9 = arith.constant 9.99999974E-6 : f32
    %17 = vector.broadcast %cst_9 : f32 to vector<32x1xf32>
    %18 = arith.addf %14, %17 : vector<32x1xf32>
    %19 = math.rsqrt %18 : vector<32x1xf32>
    %20 = vector.broadcast %19 : vector<32x1xf32> to vector<32x32xf32>
    %21 = arith.mulf %16, %20 : vector<32x32xf32>
    %22 = vector.broadcast %2 : vector<1x32xf32> to vector<32x32xf32>
    %23 = arith.mulf %21, %22 : vector<32x32xf32>
    %24 = vector.broadcast %3 : vector<1x32xf32> to vector<32x32xf32>
    %25 = arith.addf %23, %24 : vector<32x32xf32>
    %c0_10 = arith.constant 0 : index
    %c0_11 = arith.constant 0 : index
    %26 = vector.load %arg5[%c0_10, %c0_11] : memref<32x96xf32, #tpu.memory_space<vmem>>, vector<32x96xf32>
    %cst_12 = arith.constant dense<0.000000e+00> : vector<32x96xf32>
    %27 = tpu.matmul %25, %26, %cst_12 {dimension_numbers = #tpu.dot_dimension_numbers<[1], [0], [0], [1], [0, 0, 1, 1], [], []>} : vector<32x32xf32>, vector<32x96xf32>, vector<32x96xf32> -> vector<32x96xf32>
    %c0_13 = arith.constant 0 : index
    %c0_14 = arith.constant 0 : index
    %28 = vector.load %arg6[%c0_13, %c0_14] : memref<1x96xf32, #tpu.memory_space<vmem>>, vector<1x96xf32>
    %29 = vector.broadcast %28 : vector<1x96xf32> to vector<32x96xf32>
    %30 = arith.addf %27, %29 : vector<32x96xf32>
    %31 = vector.extract_strided_slice %30 {offsets = [0, 0], sizes = [32, 8], strides = [1, 1]} : vector<32x96xf32> to vector<32x8xf32>
    %c0_15 = arith.constant 0 : index
    %c0_16 = arith.constant 0 : index
    %c0_17 = arith.constant 0 : index
    %c0_18 = arith.constant 0 : index
    %32 = vector.load %arg7[%c0_15, %c0_16, %c0_17, %c0_18] : memref<1x4x32x8xf32, #tpu.memory_space<vmem>>, vector<1x1x32x8xf32>
    %33 = vector.shape_cast %32 : vector<1x1x32x8xf32> to vector<32x8xf32>
    %34 = vector.shape_cast %31 : vector<32x8xf32> to vector<1x1x32x8xf32>
    tpu.vector_store %arg7[%c0_15, %c0_16, %c0_17, %c0_18], %34 {strides = array<i32>} : memref<1x4x32x8xf32, #tpu.memory_space<vmem>>, vector<1x1x32x8xf32>,
    %35 = vector.extract_strided_slice %30 {offsets = [0, 32], sizes = [32, 8], strides = [1, 1]} : vector<32x96xf32> to vector<32x8xf32>
    %c0_19 = arith.constant 0 : index
    %c0_20 = arith.constant 0 : index
    %c0_21 = arith.constant 0 : index
    %c0_22 = arith.constant 0 : index
    %36 = vector.load %arg8[%c0_19, %c0_20, %c0_21, %c0_22] : memref<1x4x32x8xf32, #tpu.memory_space<vmem>>, vector<1x1x32x8xf32>
    %37 = vector.shape_cast %36 : vector<1x1x32x8xf32> to vector<32x8xf32>
    %38 = vector.shape_cast %35 : vector<32x8xf32> to vector<1x1x32x8xf32>
    tpu.vector_store %arg8[%c0_19, %c0_20, %c0_21, %c0_22], %38 {strides = array<i32>} : memref<1x4x32x8xf32, #tpu.memory_space<vmem>>, vector<1x1x32x8xf32>,
    %39 = vector.extract_strided_slice %30 {offsets = [0, 64], sizes = [32, 8], strides = [1, 1]} : vector<32x96xf32> to vector<32x8xf32>
    %c0_23 = arith.constant 0 : index
    %c0_24 = arith.constant 0 : index
    %c0_25 = arith.constant 0 : index
    %c0_26 = arith.constant 0 : index
    %40 = vector.load %arg9[%c0_23, %c0_24, %c0_25, %c0_26] : memref<1x4x32x8xf32, #tpu.memory_space<vmem>>, vector<1x1x32x8xf32>
    %41 = vector.shape_cast %40 : vector<1x1x32x8xf32> to vector<32x8xf32>
    %42 = vector.shape_cast %39 : vector<32x8xf32> to vector<1x1x32x8xf32>
    tpu.vector_store %arg9[%c0_23, %c0_24, %c0_25, %c0_26], %42 {strides = array<i32>} : memref<1x4x32x8xf32, #tpu.memory_space<vmem>>, vector<1x1x32x8xf32>,
    %43 = vector.extract_strided_slice %30 {offsets = [0, 8], sizes = [32, 8], strides = [1, 1]} : vector<32x96xf32> to vector<32x8xf32>
    %c0_27 = arith.constant 0 : index
    %c1 = arith.constant 1 : index
    %c0_28 = arith.constant 0 : index
    %c0_29 = arith.constant 0 : index
    %44 = vector.load %arg7[%c0_27, %c1, %c0_28, %c0_29] : memref<1x4x32x8xf32, #tpu.memory_space<vmem>>, vector<1x1x32x8xf32>
    %45 = vector.shape_cast %44 : vector<1x1x32x8xf32> to vector<32x8xf32>
    %46 = vector.shape_cast %43 : vector<32x8xf32> to vector<1x1x32x8xf32>
    tpu.vector_store %arg7[%c0_27, %c1, %c0_28, %c0_29], %46 {strides = array<i32>} : memref<1x4x32x8xf32, #tpu.memory_space<vmem>>, vector<1x1x32x8xf32>,
    %47 = vector.extract_strided_slice %30 {offsets = [0, 40], sizes = [32, 8], strides = [1, 1]} : vector<32x96xf32> to vector<32x8xf32>
    %c0_30 = arith.constant 0 : index
    %c1_31 = arith.constant 1 : index
    %c0_32 = arith.constant 0 : index
    %c0_33 = arith.constant 0 : index
    %48 = vector.load %arg8[%c0_30, %c1_31, %c0_32, %c0_33] : memref<1x4x32x8xf32, #tpu.memory_space<vmem>>, vector<1x1x32x8xf32>
    %49 = vector.shape_cast %48 : vector<1x1x32x8xf32> to vector<32x8xf32>
    %50 = vector.shape_cast %47 : vector<32x8xf32> to vector<1x1x32x8xf32>
    tpu.vector_store %arg8[%c0_30, %c1_31, %c0_32, %c0_33], %50 {strides = array<i32>} : memref<1x4x32x8xf32, #tpu.memory_space<vmem>>, vector<1x1x32x8xf32>,
    %51 = vector.extract_strided_slice %30 {offsets = [0, 72], sizes = [32, 8], strides = [1, 1]} : vector<32x96xf32> to vector<32x8xf32>
    %c0_34 = arith.constant 0 : index
    %c1_35 = arith.constant 1 : index
    %c0_36 = arith.constant 0 : index
    %c0_37 = arith.constant 0 : index
    %52 = vector.load %arg9[%c0_34, %c1_35, %c0_36, %c0_37] : memref<1x4x32x8xf32, #tpu.memory_space<vmem>>, vector<1x1x32x8xf32>
    %53 = vector.shape_cast %52 : vector<1x1x32x8xf32> to vector<32x8xf32>
    %54 = vector.shape_cast %51 : vector<32x8xf32> to vector<1x1x32x8xf32>
    tpu.vector_store %arg9[%c0_34, %c1_35, %c0_36, %c0_37], %54 {strides = array<i32>} : memref<1x4x32x8xf32, #tpu.memory_space<vmem>>, vector<1x1x32x8xf32>,
    %55 = vector.extract_strided_slice %30 {offsets = [0, 16], sizes = [32, 8], strides = [1, 1]} : vector<32x96xf32> to vector<32x8xf32>
    %c0_38 = arith.constant 0 : index
    %c2 = arith.constant 2 : index
    %c0_39 = arith.constant 0 : index
    %c0_40 = arith.constant 0 : index
    %56 = vector.load %arg7[%c0_38, %c2, %c0_39, %c0_40] : memref<1x4x32x8xf32, #tpu.memory_space<vmem>>, vector<1x1x32x8xf32>
    %57 = vector.shape_cast %56 : vector<1x1x32x8xf32> to vector<32x8xf32>
    %58 = vector.shape_cast %55 : vector<32x8xf32> to vector<1x1x32x8xf32>
    tpu.vector_store %arg7[%c0_38, %c2, %c0_39, %c0_40], %58 {strides = array<i32>} : memref<1x4x32x8xf32, #tpu.memory_space<vmem>>, vector<1x1x32x8xf32>,
    %59 = vector.extract_strided_slice %30 {offsets = [0, 48], sizes = [32, 8], strides = [1, 1]} : vector<32x96xf32> to vector<32x8xf32>
    %c0_41 = arith.constant 0 : index
    %c2_42 = arith.constant 2 : index
    %c0_43 = arith.constant 0 : index
    %c0_44 = arith.constant 0 : index
    %60 = vector.load %arg8[%c0_41, %c2_42, %c0_43, %c0_44] : memref<1x4x32x8xf32, #tpu.memory_space<vmem>>, vector<1x1x32x8xf32>
    %61 = vector.shape_cast %60 : vector<1x1x32x8xf32> to vector<32x8xf32>
    %62 = vector.shape_cast %59 : vector<32x8xf32> to vector<1x1x32x8xf32>
    tpu.vector_store %arg8[%c0_41, %c2_42, %c0_43, %c0_44], %62 {strides = array<i32>} : memref<1x4x32x8xf32, #tpu.memory_space<vmem>>, vector<1x1x32x8xf32>,
    %63 = vector.extract_strided_slice %30 {offsets = [0, 80], sizes = [32, 8], strides = [1, 1]} : vector<32x96xf32> to vector<32x8xf32>
    %c0_45 = arith.constant 0 : index
    %c2_46 = arith.constant 2 : index
    %c0_47 = arith.constant 0 : index
    %c0_48 = arith.constant 0 : index
    %64 = vector.load %arg9[%c0_45, %c2_46, %c0_47, %c0_48] : memref<1x4x32x8xf32, #tpu.memory_space<vmem>>, vector<1x1x32x8xf32>
    %65 = vector.shape_cast %64 : vector<1x1x32x8xf32> to vector<32x8xf32>
    %66 = vector.shape_cast %63 : vector<32x8xf32> to vector<1x1x32x8xf32>
    tpu.vector_store %arg9[%c0_45, %c2_46, %c0_47, %c0_48], %66 {strides = array<i32>} : memref<1x4x32x8xf32, #tpu.memory_space<vmem>>, vector<1x1x32x8xf32>,
    %67 = vector.extract_strided_slice %30 {offsets = [0, 24], sizes = [32, 8], strides = [1, 1]} : vector<32x96xf32> to vector<32x8xf32>
    %c0_49 = arith.constant 0 : index
    %c3 = arith.constant 3 : index
    %c0_50 = arith.constant 0 : index
    %c0_51 = arith.constant 0 : index
    %68 = vector.load %arg7[%c0_49, %c3, %c0_50, %c0_51] : memref<1x4x32x8xf32, #tpu.memory_space<vmem>>, vector<1x1x32x8xf32>
    %69 = vector.shape_cast %68 : vector<1x1x32x8xf32> to vector<32x8xf32>
    %70 = vector.shape_cast %67 : vector<32x8xf32> to vector<1x1x32x8xf32>
    tpu.vector_store %arg7[%c0_49, %c3, %c0_50, %c0_51], %70 {strides = array<i32>} : memref<1x4x32x8xf32, #tpu.memory_space<vmem>>, vector<1x1x32x8xf32>,
    %71 = vector.extract_strided_slice %30 {offsets = [0, 56], sizes = [32, 8], strides = [1, 1]} : vector<32x96xf32> to vector<32x8xf32>
    %c0_52 = arith.constant 0 : index
    %c3_53 = arith.constant 3 : index
    %c0_54 = arith.constant 0 : index
    %c0_55 = arith.constant 0 : index
    %72 = vector.load %arg8[%c0_52, %c3_53, %c0_54, %c0_55] : memref<1x4x32x8xf32, #tpu.memory_space<vmem>>, vector<1x1x32x8xf32>
    %73 = vector.shape_cast %72 : vector<1x1x32x8xf32> to vector<32x8xf32>
    %74 = vector.shape_cast %71 : vector<32x8xf32> to vector<1x1x32x8xf32>
    tpu.vector_store %arg8[%c0_52, %c3_53, %c0_54, %c0_55], %74 {strides = array<i32>} : memref<1x4x32x8xf32, #tpu.memory_space<vmem>>, vector<1x1x32x8xf32>,
    %75 = vector.extract_strided_slice %30 {offsets = [0, 88], sizes = [32, 8], strides = [1, 1]} : vector<32x96xf32> to vector<32x8xf32>
    %c0_56 = arith.constant 0 : index
    %c3_57 = arith.constant 3 : index
    %c0_58 = arith.constant 0 : index
    %c0_59 = arith.constant 0 : index
    %76 = vector.load %arg9[%c0_56, %c3_57, %c0_58, %c0_59] : memref<1x4x32x8xf32, #tpu.memory_space<vmem>>, vector<1x1x32x8xf32>
    %77 = vector.shape_cast %76 : vector<1x1x32x8xf32> to vector<32x8xf32>
    %78 = vector.shape_cast %75 : vector<32x8xf32> to vector<1x1x32x8xf32>
    tpu.vector_store %arg9[%c0_56, %c3_57, %c0_58, %c0_59], %78 {strides = array<i32>} : memref<1x4x32x8xf32, #tpu.memory_space<vmem>>, vector<1x1x32x8xf32>,
    return
  }
  func.func @transform_0(%arg0: i32, %arg1: i32) -> (i32, i32, i32) {
    %c0_i32 = arith.constant 0 : i32
    %c0_i32_0 = arith.constant 0 : i32
    return %arg0, %arg1, %c0_i32 : i32, i32, i32
  }
  func.func @transform_1(%arg0: i32, %arg1: i32) -> (i32, i32) {
    %c0_i32 = arith.constant 0 : i32
    %c0_i32_0 = arith.constant 0 : i32
    %c0_i32_1 = arith.constant 0 : i32
    return %c0_i32, %c0_i32_0 : i32, i32
  }
  func.func @transform_2(%arg0: i32, %arg1: i32) -> (i32, i32) {
    %c0_i32 = arith.constant 0 : i32
    %c0_i32_0 = arith.constant 0 : i32
    %c0_i32_1 = arith.constant 0 : i32
    return %c0_i32, %c0_i32_0 : i32, i32
  }
  func.func @transform_3(%arg0: i32, %arg1: i32) -> (i32, i32) {
    %c0_i32 = arith.constant 0 : i32
    %c0_i32_0 = arith.constant 0 : i32
    %c0_i32_1 = arith.constant 0 : i32
    return %c0_i32, %c0_i32_0 : i32, i32
  }
  func.func @transform_4(%arg0: i32, %arg1: i32) -> (i32, i32) {
    %c0_i32 = arith.constant 0 : i32
    %c0_i32_0 = arith.constant 0 : i32
    %c0_i32_1 = arith.constant 0 : i32
    return %c0_i32, %c0_i32_0 : i32, i32
  }
  func.func @transform_5(%arg0: i32, %arg1: i32) -> (i32, i32, i32, i32) {
    %c0_i32 = arith.constant 0 : i32
    %c0_i32_0 = arith.constant 0 : i32
    %c0_i32_1 = arith.constant 0 : i32
    return %arg0, %c0_i32, %arg1, %c0_i32_0 : i32, i32, i32, i32
  }
  func.func @transform_6(%arg0: i32, %arg1: i32) -> (i32, i32, i32, i32) {
    %c0_i32 = arith.constant 0 : i32
    %c0_i32_0 = arith.constant 0 : i32
    %c0_i32_1 = arith.constant 0 : i32
    return %arg0, %c0_i32, %arg1, %c0_i32_0 : i32, i32, i32, i32
  }
  func.func @transform_7(%arg0: i32, %arg1: i32) -> (i32, i32, i32, i32) {
    %c0_i32 = arith.constant 0 : i32
    %c0_i32_0 = arith.constant 0 : i32
    %c0_i32_1 = arith.constant 0 : i32
    return %arg0, %c0_i32, %arg1, %c0_i32_0 : i32, i32, i32, i32
  }
}

module attributes {stable_mosaic.version = 11 : i64} {
  func.func @_qkv_proj_kernel(%arg0: i32, %arg1: i32, %arg2: memref<1x32x32xf32, #tpu.memory_space<vmem>>, %arg3: memref<1x32xf32, #tpu.memory_space<vmem>>, %arg4: memref<1x32xf32, #tpu.memory_space<vmem>>, %arg5: memref<32x96xf32, #tpu.memory_space<vmem>>, %arg6: memref<1x96xf32, #tpu.memory_space<vmem>>, %arg7: memref<1x4x32x8xf32, #tpu.memory_space<vmem>>, %arg8: memref<1x4x32x8xf32, #tpu.memory_space<vmem>>, %arg9: memref<1x4x32x8xf32, #tpu.memory_space<vmem>>) attributes {dimension_semantics = [#tpu.dimension_semantics<parallel>, #tpu.dimension_semantics<parallel>], iteration_bounds = array<i64: 2, 2>, scalar_prefetch = 0 : i64, scratch_operands = 0 : i64, tpu.core_type = #tpu.core_type<tc>, window_params = [{transform_indices = @transform_0, window_bounds = array<i64: 1, 32, 32>}, {pipeline_mode = #tpu.pipeline_mode<synchronous>, transform_indices = @transform_1, window_bounds = array<i64: 1, 32>}, {pipeline_mode = #tpu.pipeline_mode<synchronous>, transform_indices = @transform_2, window_bounds = array<i64: 1, 32>}, {pipeline_mode = #tpu.pipeline_mode<synchronous>, transform_indices = @transform_3, window_bounds = array<i64: 32, 96>}, {pipeline_mode = #tpu.pipeline_mode<synchronous>, transform_indices = @transform_4, window_bounds = array<i64: 1, 96>}, {transform_indices = @transform_5, window_bounds = array<i64: 1, 4, 32, 8>}, {transform_indices = @transform_6, window_bounds = array<i64: 1, 4, 32, 8>}, {transform_indices = @transform_7, window_bounds = array<i64: 1, 4, 32, 8>}]} {
    %c0 = arith.constant 0 : index
    %c0_0 = arith.constant 0 : index
    %c0_1 = arith.constant 0 : index
    %0 = vector.load %arg2[%c0, %c0_0, %c0_1] : memref<1x32x32xf32, #tpu.memory_space<vmem>>, vector<1x32x32xf32>
    %1 = vector.shape_cast %0 : vector<1x32x32xf32> to vector<32x32xf32>
    %c0_2 = arith.constant 0 : index
    %c0_3 = arith.constant 0 : index
    %2 = vector.load %arg3[%c0_2, %c0_3] : memref<1x32xf32, #tpu.memory_space<vmem>>, vector<1x32xf32>
    %c0_4 = arith.constant 0 : index
    %c0_5 = arith.constant 0 : index
    %3 = vector.load %arg4[%c0_4, %c0_5] : memref<1x32xf32, #tpu.memory_space<vmem>>, vector<1x32xf32>
    %cst = arith.constant dense<0.000000e+00> : vector<32xf32>
    %4 = vector.multi_reduction <add>, %1, %cst [1] : vector<32x32xf32> to vector<32xf32>
    %5 = vector.shape_cast %4 : vector<32xf32> to vector<32x1xf32>
    %cst_6 = arith.constant 3.200000e+01 : f32
    %6 = vector.broadcast %cst_6 : f32 to vector<32x1xf32>
    %7 = arith.divf %5, %6 : vector<32x1xf32>
    %8 = vector.broadcast %7 : vector<32x1xf32> to vector<32x32xf32>
    %9 = arith.subf %1, %8 : vector<32x32xf32>
    %10 = arith.mulf %9, %9 : vector<32x32xf32>
    %cst_7 = arith.constant dense<0.000000e+00> : vector<32xf32>
    %11 = vector.multi_reduction <add>, %10, %cst_7 [1] : vector<32x32xf32> to vector<32xf32>
    %12 = vector.shape_cast %11 : vector<32xf32> to vector<32x1xf32>
    %cst_8 = arith.constant 3.200000e+01 : f32
    %13 = vector.broadcast %cst_8 : f32 to vector<32x1xf32>
    %14 = arith.divf %12, %13 : vector<32x1xf32>
    %15 = vector.broadcast %7 : vector<32x1xf32> to vector<32x32xf32>
    %16 = arith.subf %1, %15 : vector<32x32xf32>
    %cst_9 = arith.constant 9.99999974E-6 : f32
    %17 = vector.broadcast %cst_9 : f32 to vector<32x1xf32>
    %18 = arith.addf %14, %17 : vector<32x1xf32>
    %19 = math.rsqrt %18 : vector<32x1xf32>
    %20 = vector.broadcast %19 : vector<32x1xf32> to vector<32x32xf32>
    %21 = arith.mulf %16, %20 : vector<32x32xf32>
    %22 = vector.broadcast %2 : vector<1x32xf32> to vector<32x32xf32>
    %23 = arith.mulf %21, %22 : vector<32x32xf32>
    %24 = vector.broadcast %3 : vector<1x32xf32> to vector<32x32xf32>
    %25 = arith.addf %23, %24 : vector<32x32xf32>
    %c0_10 = arith.constant 0 : index
    %c0_11 = arith.constant 0 : index
    %26 = vector.load %arg5[%c0_10, %c0_11] : memref<32x96xf32, #tpu.memory_space<vmem>>, vector<32x96xf32>
    %cst_12 = arith.constant dense<0.000000e+00> : vector<32x96xf32>
    %27 = tpu.matmul %25, %26, %cst_12 {dimension_numbers = #tpu.dot_dimension_numbers<[1], [0], [0], [1], [0, 0, 1, 1], [], []>} : vector<32x32xf32>, vector<32x96xf32>, vector<32x96xf32> -> vector<32x96xf32>
    %c0_13 = arith.constant 0 : index
    %c0_14 = arith.constant 0 : index
    %28 = vector.load %arg6[%c0_13, %c0_14] : memref<1x96xf32, #tpu.memory_space<vmem>>, vector<1x96xf32>
    %29 = vector.broadcast %28 : vector<1x96xf32> to vector<32x96xf32>
    %30 = arith.addf %27, %29 : vector<32x96xf32>
    %31 = vector.extract_strided_slice %30 {offsets = [0, 0], sizes = [32, 8], strides = [1, 1]} : vector<32x96xf32> to vector<32x8xf32>
    %c0_15 = arith.constant 0 : index
    %c0_16 = arith.constant 0 : index
    %c0_17 = arith.constant 0 : index
    %c0_18 = arith.constant 0 : index
    %32 = vector.load %arg7[%c0_15, %c0_16, %c0_17, %c0_18] : memref<1x4x32x8xf32, #tpu.memory_space<vmem>>, vector<1x1x32x8xf32>
    %33 = vector.shape_cast %32 : vector<1x1x32x8xf32> to vector<32x8xf32>
    %34 = vector.shape_cast %31 : vector<32x8xf32> to vector<1x1x32x8xf32>
    tpu.vector_store %arg7[%c0_15, %c0_16, %c0_17, %c0_18], %34 {strides = array<i32>} : memref<1x4x32x8xf32, #tpu.memory_space<vmem>>, vector<1x1x32x8xf32>,
    %35 = vector.extract_strided_slice %30 {offsets = [0, 32], sizes = [32, 8], strides = [1, 1]} : vector<32x96xf32> to vector<32x8xf32>
    %c0_19 = arith.constant 0 : index
    %c0_20 = arith.constant 0 : index
    %c0_21 = arith.constant 0 : index
    %c0_22 = arith.constant 0 : index
    %36 = vector.load %arg8[%c0_19, %c0_20, %c0_21, %c0_22] : memref<1x4x32x8xf32, #tpu.memory_space<vmem>>, vector<1x1x32x8xf32>
    %37 = vector.shape_cast %36 : vector<1x1x32x8xf32> to vector<32x8xf32>
    %38 = vector.shape_cast %35 : vector<32x8xf32> to vector<1x1x32x8xf32>
    tpu.vector_store %arg8[%c0_19, %c0_20, %c0_21, %c0_22], %38 {strides = array<i32>} : memref<1x4x32x8xf32, #tpu.memory_space<vmem>>, vector<1x1x32x8xf32>,
    %39 = vector.extract_strided_slice %30 {offsets = [0, 64], sizes = [32, 8], strides = [1, 1]} : vector<32x96xf32> to vector<32x8xf32>
    %c0_23 = arith.constant 0 : index
    %c0_24 = arith.constant 0 : index
    %c0_25 = arith.constant 0 : index
    %c0_26 = arith.constant 0 : index
    %40 = vector.load %arg9[%c0_23, %c0_24, %c0_25, %c0_26] : memref<1x4x32x8xf32, #tpu.memory_space<vmem>>, vector<1x1x32x8xf32>
    %41 = vector.shape_cast %40 : vector<1x1x32x8xf32> to vector<32x8xf32>
    %42 = vector.shape_cast %39 : vector<32x8xf32> to vector<1x1x32x8xf32>
    tpu.vector_store %arg9[%c0_23, %c0_24, %c0_25, %c0_26], %42 {strides = array<i32>} : memref<1x4x32x8xf32, #tpu.memory_space<vmem>>, vector<1x1x32x8xf32>,
    %43 = vector.extract_strided_slice %30 {offsets = [0, 8], sizes = [32, 8], strides = [1, 1]} : vector<32x96xf32> to vector<32x8xf32>
    %c0_27 = arith.constant 0 : index
    %c1 = arith.constant 1 : index
    %c0_28 = arith.constant 0 : index
    %c0_29 = arith.constant 0 : index
    %44 = vector.load %arg7[%c0_27, %c1, %c0_28, %c0_29] : memref<1x4x32x8xf32, #tpu.memory_space<vmem>>, vector<1x1x32x8xf32>
    %45 = vector.shape_cast %44 : vector<1x1x32x8xf32> to vector<32x8xf32>
    %46 = vector.shape_cast %43 : vector<32x8xf32> to vector<1x1x32x8xf32>
    tpu.vector_store %arg7[%c0_27, %c1, %c0_28, %c0_29], %46 {strides = array<i32>} : memref<1x4x32x8xf32, #tpu.memory_space<vmem>>, vector<1x1x32x8xf32>,
    %47 = vector.extract_strided_slice %30 {offsets = [0, 40], sizes = [32, 8], strides = [1, 1]} : vector<32x96xf32> to vector<32x8xf32>
    %c0_30 = arith.constant 0 : index
    %c1_31 = arith.constant 1 : index
    %c0_32 = arith.constant 0 : index
    %c0_33 = arith.constant 0 : index
    %48 = vector.load %arg8[%c0_30, %c1_31, %c0_32, %c0_33] : memref<1x4x32x8xf32, #tpu.memory_space<vmem>>, vector<1x1x32x8xf32>
    %49 = vector.shape_cast %48 : vector<1x1x32x8xf32> to vector<32x8xf32>
    %50 = vector.shape_cast %47 : vector<32x8xf32> to vector<1x1x32x8xf32>
    tpu.vector_store %arg8[%c0_30, %c1_31, %c0_32, %c0_33], %50 {strides = array<i32>} : memref<1x4x32x8xf32, #tpu.memory_space<vmem>>, vector<1x1x32x8xf32>,
    %51 = vector.extract_strided_slice %30 {offsets = [0, 72], sizes = [32, 8], strides = [1, 1]} : vector<32x96xf32> to vector<32x8xf32>
    %c0_34 = arith.constant 0 : index
    %c1_35 = arith.constant 1 : index
    %c0_36 = arith.constant 0 : index
    %c0_37 = arith.constant 0 : index
    %52 = vector.load %arg9[%c0_34, %c1_35, %c0_36, %c0_37] : memref<1x4x32x8xf32, #tpu.memory_space<vmem>>, vector<1x1x32x8xf32>
    %53 = vector.shape_cast %52 : vector<1x1x32x8xf32> to vector<32x8xf32>
    %54 = vector.shape_cast %51 : vector<32x8xf32> to vector<1x1x32x8xf32>
    tpu.vector_store %arg9[%c0_34, %c1_35, %c0_36, %c0_37], %54 {strides = array<i32>} : memref<1x4x32x8xf32, #tpu.memory_space<vmem>>, vector<1x1x32x8xf32>,
    %55 = vector.extract_strided_slice %30 {offsets = [0, 16], sizes = [32, 8], strides = [1, 1]} : vector<32x96xf32> to vector<32x8xf32>
    %c0_38 = arith.constant 0 : index
    %c2 = arith.constant 2 : index
    %c0_39 = arith.constant 0 : index
    %c0_40 = arith.constant 0 : index
    %56 = vector.load %arg7[%c0_38, %c2, %c0_39, %c0_40] : memref<1x4x32x8xf32, #tpu.memory_space<vmem>>, vector<1x1x32x8xf32>
    %57 = vector.shape_cast %56 : vector<1x1x32x8xf32> to vector<32x8xf32>
    %58 = vector.shape_cast %55 : vector<32x8xf32> to vector<1x1x32x8xf32>
    tpu.vector_store %arg7[%c0_38, %c2, %c0_39, %c0_40], %58 {strides = array<i32>} : memref<1x4x32x8xf32, #tpu.memory_space<vmem>>, vector<1x1x32x8xf32>,
    %59 = vector.extract_strided_slice %30 {offsets = [0, 48], sizes = [32, 8], strides = [1, 1]} : vector<32x96xf32> to vector<32x8xf32>
    %c0_41 = arith.constant 0 : index
    %c2_42 = arith.constant 2 : index
    %c0_43 = arith.constant 0 : index
    %c0_44 = arith.constant 0 : index
    %60 = vector.load %arg8[%c0_41, %c2_42, %c0_43, %c0_44] : memref<1x4x32x8xf32, #tpu.memory_space<vmem>>, vector<1x1x32x8xf32>
    %61 = vector.shape_cast %60 : vector<1x1x32x8xf32> to vector<32x8xf32>
    %62 = vector.shape_cast %59 : vector<32x8xf32> to vector<1x1x32x8xf32>
    tpu.vector_store %arg8[%c0_41, %c2_42, %c0_43, %c0_44], %62 {strides = array<i32>} : memref<1x4x32x8xf32, #tpu.memory_space<vmem>>, vector<1x1x32x8xf32>,
    %63 = vector.extract_strided_slice %30 {offsets = [0, 80], sizes = [32, 8], strides = [1, 1]} : vector<32x96xf32> to vector<32x8xf32>
    %c0_45 = arith.constant 0 : index
    %c2_46 = arith.constant 2 : index
    %c0_47 = arith.constant 0 : index
    %c0_48 = arith.constant 0 : index
    %64 = vector.load %arg9[%c0_45, %c2_46, %c0_47, %c0_48] : memref<1x4x32x8xf32, #tpu.memory_space<vmem>>, vector<1x1x32x8xf32>
    %65 = vector.shape_cast %64 : vector<1x1x32x8xf32> to vector<32x8xf32>
    %66 = vector.shape_cast %63 : vector<32x8xf32> to vector<1x1x32x8xf32>
    tpu.vector_store %arg9[%c0_45, %c2_46, %c0_47, %c0_48], %66 {strides = array<i32>} : memref<1x4x32x8xf32, #tpu.memory_space<vmem>>, vector<1x1x32x8xf32>,
    %67 = vector.extract_strided_slice %30 {offsets = [0, 24], sizes = [32, 8], strides = [1, 1]} : vector<32x96xf32> to vector<32x8xf32>
    %c0_49 = arith.constant 0 : index
    %c3 = arith.constant 3 : index
    %c0_50 = arith.constant 0 : index
    %c0_51 = arith.constant 0 : index
    %68 = vector.load %arg7[%c0_49, %c3, %c0_50, %c0_51] : memref<1x4x32x8xf32, #tpu.memory_space<vmem>>, vector<1x1x32x8xf32>
    %69 = vector.shape_cast %68 : vector<1x1x32x8xf32> to vector<32x8xf32>
    %70 = vector.shape_cast %67 : vector<32x8xf32> to vector<1x1x32x8xf32>
    tpu.vector_store %arg7[%c0_49, %c3, %c0_50, %c0_51], %70 {strides = array<i32>} : memref<1x4x32x8xf32, #tpu.memory_space<vmem>>, vector<1x1x32x8xf32>,
    %71 = vector.extract_strided_slice %30 {offsets = [0, 56], sizes = [32, 8], strides = [1, 1]} : vector<32x96xf32> to vector<32x8xf32>
    %c0_52 = arith.constant 0 : index
    %c3_53 = arith.constant 3 : index
    %c0_54 = arith.constant 0 : index
    %c0_55 = arith.constant 0 : index
    %72 = vector.load %arg8[%c0_52, %c3_53, %c0_54, %c0_55] : memref<1x4x32x8xf32, #tpu.memory_space<vmem>>, vector<1x1x32x8xf32>
    %73 = vector.shape_cast %72 : vector<1x1x32x8xf32> to vector<32x8xf32>
    %74 = vector.shape_cast %71 : vector<32x8xf32> to vector<1x1x32x8xf32>
    tpu.vector_store %arg8[%c0_52, %c3_53, %c0_54, %c0_55], %74 {strides = array<i32>} : memref<1x4x32x8xf32, #tpu.memory_space<vmem>>, vector<1x1x32x8xf32>,
    %75 = vector.extract_strided_slice %30 {offsets = [0, 88], sizes = [32, 8], strides = [1, 1]} : vector<32x96xf32> to vector<32x8xf32>
    %c0_56 = arith.constant 0 : index
    %c3_57 = arith.constant 3 : index
    %c0_58 = arith.constant 0 : index
    %c0_59 = arith.constant 0 : index
    %76 = vector.load %arg9[%c0_56, %c3_57, %c0_58, %c0_59] : memref<1x4x32x8xf32, #tpu.memory_space<vmem>>, vector<1x1x32x8xf32>
    %77 = vector.shape_cast %76 : vector<1x1x32x8xf32> to vector<32x8xf32>
    %78 = vector.shape_cast %75 : vector<32x8xf32> to vector<1x1x32x8xf32>
    tpu.vector_store %arg9[%c0_56, %c3_57, %c0_58, %c0_59], %78 {strides = array<i32>} : memref<1x4x32x8xf32, #tpu.memory_space<vmem>>, vector<1x1x32x8xf32>,
    return
  }
  func.func @transform_0(%arg0: i32, %arg1: i32) -> (i32, i32, i32) {
    %c0_i32 = arith.constant 0 : i32
    %c0_i32_0 = arith.constant 0 : i32
    return %arg0, %arg1, %c0_i32 : i32, i32, i32
  }
  func.func @transform_1(%arg0: i32, %arg1: i32) -> (i32, i32) {
    %c0_i32 = arith.constant 0 : i32
    %c0_i32_0 = arith.constant 0 : i32
    %c0_i32_1 = arith.constant 0 : i32
    return %c0_i32, %c0_i32_0 : i32, i32
  }
  func.func @transform_2(%arg0: i32, %arg1: i32) -> (i32, i32) {
    %c0_i32 = arith.constant 0 : i32
    %c0_i32_0 = arith.constant 0 : i32
    %c0_i32_1 = arith.constant 0 : i32
    return %c0_i32, %c0_i32_0 : i32, i32
  }
  func.func @transform_3(%arg0: i32, %arg1: i32) -> (i32, i32) {
    %c0_i32 = arith.constant 0 : i32
    %c0_i32_0 = arith.constant 0 : i32
    %c0_i32_1 = arith.constant 0 : i32
    return %c0_i32, %c0_i32_0 : i32, i32
  }
  func.func @transform_4(%arg0: i32, %arg1: i32) -> (i32, i32) {
    %c0_i32 = arith.constant 0 : i32
    %c0_i32_0 = arith.constant 0 : i32
    %c0_i32_1 = arith.constant 0 : i32
    return %c0_i32, %c0_i32_0 : i32, i32
  }
  func.func @transform_5(%arg0: i32, %arg1: i32) -> (i32, i32, i32, i32) {
    %c0_i32 = arith.constant 0 : i32
    %c0_i32_0 = arith.constant 0 : i32
    %c0_i32_1 = arith.constant 0 : i32
    return %arg0, %c0_i32, %arg1, %c0_i32_0 : i32, i32, i32, i32
  }
  func.func @transform_6(%arg0: i32, %arg1: i32) -> (i32, i32, i32, i32) {
    %c0_i32 = arith.constant 0 : i32
    %c0_i32_0 = arith.constant 0 : i32
    %c0_i32_1 = arith.constant 0 : i32
    return %arg0, %c0_i32, %arg1, %c0_i32_0 : i32, i32, i32, i32
  }
  func.func @transform_7(%arg0: i32, %arg1: i32) -> (i32, i32, i32, i32) {
    %c0_i32 = arith.constant 0 : i32
    %c0_i32_0 = arith.constant 0 : i32
    %c0_i32_1 = arith.constant 0 : i32
    return %arg0, %c0_i32, %arg1, %c0_i32_0 : i32, i32, i32, i32
  }
}

</mosaic_0001>

<bundles_post_ra>
// kernel: tpu_custom_call.1
= control target key start
LH: loop header
LB: loop body
LE: loop exit
PB: predicated region body
PF: predicated region fallthrough
CT: control target
= control target key end

     0   :  { %s1434_s24 = smov 0   ;;  %s1436_s25 = smov 0   ;;  %s1735_s0 = inlined_call_operand.vmem [shape: f32[2,64,32], index: 0, kind: input, shape index: {}]   ;;  %s1736_s1 = inlined_call_operand.vmem [shape: f32[1,32], index: 1, kind: input, shape index: {}]   ;;  %s1737_s2 = inlined_call_operand.vmem [shape: f32[1,32], index: 2, kind: input, shape index: {}]   ;;  %s1738_s3 = inlined_call_operand.vmem [shape: f32[32,96], index: 3, kind: input, shape index: {}]   ;;  %s1739_s4 = inlined_call_operand.vmem [shape: f32[1,96], index: 4, kind: input, shape index: {}]   ;;  %s1740_s5 = inlined_call_operand.vmem [shape: f32[2,4,64,8], index: 5, kind: output, shape index: {0}]   ;;  %s1741_s6 = inlined_call_operand.vmem [shape: f32[2,4,64,8], index: 6, kind: output, shape index: {1}]   ;;  %s1742_s7 = inlined_call_operand.vmem [shape: f32[2,4,64,8], index: 7, kind: output, shape index: {2}]  }
   0x1   :  { %s1438_s26 = smov 0   ;;  %s1440_s27 = smov 0  }
   0x2   :  { %s1442_s28 = smov 0   ;;  %s1444_s29 = smov 0  }
   0x3   :  { %s1446_s30 = smov 0  }
   0x4 LB: > { %s27_s8 = sadd.s32 1, %s1373_s28  ;;  %s30_s9 = sadd.s32 1, %s1377_s29  ;;  %s1381_s30 = sphi %s1446_s30, %s18_s30   ;;  %s1377_s29 = sphi %s1444_s29, %s1749_s29   ;;  %s1373_s28 = sphi %s1442_s28, %s1748_s28   ;;  %s1369_s27 = sphi %s1440_s27, %s1747_s27   ;;  %s1365_s26 = sphi %s1438_s26, %s1746_s26   ;;  %s1361_s25 = sphi %s1436_s25, %s1745_s25   ;;  %s1357_s24 = sphi %s1434_s24, %s1744_s24  }
   0x5   : > { %p28_p0 = scmp.ge.s32.totalorder %s27_s8, 2  ;;  %s1150_s10 = sadd.s32 4294967295, %s1381_s30  }
   0x6   : > { %p161_p1 = scmp.ne.s32.totalorder %s1361_s25, %s1357_s24  ;;  %p162_p2 = scmp.eq.s32.totalorder %s1150_s10, 3 }
   0x7   : > { %s1751_s8 = smov (%p28_p0, %s27_s8), 0  ;;  %s1753_s9 = smov (!%p28_p0, %s30_s9), %s1377_s29 }
   0x8   : > { %s147_s11 = ssub.s32 %s1373_s28, %s1751_s8  ;;  %p32_p3 = scmp.ge.s32.totalorder %s1753_s9, 2 }
   0x9   : > { %p1154_p4 = scmp.ge.s32.totalorder %s1381_s30, 1  ;;  %p1478_p5 = por %p162_p2, %p161_p1 }
   0xa   : > { %p267_p6 = scmp.lt.s32.totalorder %s1381_s30, 5  ;;  %s1755_s9 = smov (%p32_p3, %s1753_s9), 0 }
   0xb   : > { %s146_s13 = ssub.s32 %s1377_s29, %s1755_s9  ;;  %s151_s15 = sadd.s32 1, %s1361_s25 }
   0xc   : > { %p268_p7 = pnand %p1154_p4, %p267_p6  ;;  %s148_s14 = sor.u32 %s147_s11, %s146_s13 }
   0xd   : > { %p149_p8 = scmp.eq.s32.totalorder %s148_s14, 0  ;;  %s1491_s17 = sshll.u32 (!%p268_p7), %s1365_s26, 2  ;;  %vm329_vm0 = vcmask (!%p268_p7), 261120   ;;  %v403_v28 = vld [vmem:[%s1738_s3] sm:$0xff] (!%p268_p7)  ;;  %v404_v29 = vld [vmem:[%s1738_s3 + $0x8] sm:$0xff] (!%p268_p7)  ;;  %v405_v30 = vld [vmem:[%s1738_s3 + $0x10] sm:$0xff] (!%p268_p7) }
   0xe   : > { %271 = sbr.rel (%p268_p7) target bundleno = 788 (0x314), region = 40  ;;  %p311_p9 = scmp.lt.s32.totalorder (!%p268_p7), %s1369_s27, 1  ;;  %v1240_v31 = vpack.c.bf16 (!%p268_p7), %v404_v29, %v403_v28  ;;  %v406_v32 = vld [vmem:[%s1738_s3 + $0x18] sm:$0xff] (!%p268_p7)  ;;  %v1161_v47 = vld [vmem:[%s1736_s1] ss:$0 sm:$0xff] (!%p268_p7)  ;;  %vm511_vm1 = vcmask (!%p268_p7), 64512  }
   0xf   : > { %s1489_s16 = scalar_select %p149_p8, %s1361_s25, %s151_s15  }
  0x10   : > { %p313_p10 = scmp.lt.s32.totalorder (!%p268_p7), %s1491_s17, 7  ;;  %v1244_v33 = vpack.c.bf16 (!%p268_p7), %v406_v32, %v405_v30  ;;  %1241 = vmatprep.subr.bf16.mxu0 (!%p268_p7), %v1240_v31  ;;  %1248 = vmatprep.subr.bf16.mxu1 (!%p268_p7), %v1240_v31  ;;  %v1162_v49 = vld [vmem:[%s1737_s2] ss:$0 sm:$0xff] (!%p268_p7)  ;;  %s295_s26 = sand.u32 (!%p268_p7), 1, %s1357_s24  }
  0x11   : > { %1243 = vmatpush3.bf16.msra.mxu0 (!%p268_p7), %v1240_v31  ;;  %1250 = vmatpush3.bf16.msra.mxu1 (!%p268_p7), %v1240_v31  ;;  %s1531_s13 = sshll.u32 (!%p268_p7), %s295_s26, 7  ;;  %s1384_s24 = smov (!%p268_p7), 64  }
  0x12   : > { %1245 = vmatprep.subr.bf16.mxu0 (!%p268_p7), %v1244_v33  ;;  %1249 = vmatprep.subr.bf16.mxu1 (!%p268_p7), %v1244_v33  ;;  %s1388_s23 = smov (!%p268_p7), 112   ;;  %s1389_s10 = smov (!%p268_p7), 80  }
  0x13   : > { %s1391_s26 = smov (!%p268_p7), 104   ;;  %s1392_s14 = smov (!%p268_p7), 72  }
  0x14   : > { %s1393_s15 = smov (!%p268_p7), 40  }
  0x15   : > { %s312_s18 = scalar_select %p311_p9, %s1369_s27, 1  ;;  %1247 = vmatpush3.bf16.msra.mxu0 %v1244_v33  ;;  %1251 = vmatpush3.bf16.msra.mxu1 %v1244_v33 }
  0x16   : > { %s314_s19 = scalar_select %p313_p10, %s1491_s17, 7 }
  0x17   : > { %s1159_s20 = sshll.u32 %s312_s18, 3  ;;  %s1383_s18 = smov 96  }
  0x18   : > { %s316_s21 = sadd.s32 %s1159_s20, %s314_s19  ;;  %s1538_s19 = scalar_lea.vmem [#allocation2], %s1531_s13 }
  0x19   : > { %s1160_s22 = sshll.u32 %s316_s21, 3  ;;  %s1385_s20 = smov 120  }
  0x1a   : > { %s318_s11 = scalar_lea.vmem %s1735_s0, %s1160_s22  ;;  %s1386_s21 = smov 88  }
  0x1b   : > { %v323_v0 = vld [vmem:[%s318_s11] sm:$0xff]  ;;  %v324_v1 = vld [vmem:[%s318_s11 + $0x8] sm:$0xff]  ;;  %v325_v2 = vld [vmem:[%s318_s11 + $0x10] sm:$0xff]  ;;  %s1387_s22 = smov 56  }
  0x1c   : > { %v330_v3 = vsel %vm329_vm0, %v323_v0, 0.0  ;;  %v333_v4 = vsel %vm329_vm0, %v324_v1, 0.0  ;;  %v326_v5 = vld [vmem:[%s318_s11 + $0x18] sm:$0xff]  ;;  %v336_v6 = vsel %vm329_vm0, %v325_v2, 0.0  ;;  %s1390_s11 = smov 48  }
  0x1d   : > { %331 = vadd.xlane.f32.xlu0 %v330_v3  ;;  %334 = vadd.xlane.f32.xlu1 %v333_v4  ;;  %v339_v7 = vsel %vm329_vm0, %v326_v5, 0.0 }
  0x21   : > { %337 = vadd.xlane.f32.xlu0 %v336_v6  ;;  %340 = vadd.xlane.f32.xlu1 %v339_v7 }
  0xaa   : > { %v332_v8 = vpop.xlane.xlu0 %331  ;;  %v335_v9 = vpop.xlane.xlu1 %334 }
  0xab   : > { %v343_v10 = vmul.f32 0.03125, %v332_v8  ;;  %v344_v11 = vmul.f32 0.03125, %v335_v9 }
  0xad   : > { %v347_v12 = vsub.f32 %v323_v0, %v343_v10  ;;  %v348_v13 = vsub.f32 %v324_v1, %v344_v11  ;;  %v1163_v0 = vld [vmem:[%s1739_s4] ss:$0 sm:$0xff] }
  0xae   : > { %v338_v14 = vpop.xlane.xlu0 %337  ;;  %v341_v15 = vpop.xlane.xlu1 %340 }
  0xaf   : > { %v345_v16 = vmul.f32 0.03125, %v338_v14  ;;  %v346_v17 = vmul.f32 0.03125, %v341_v15  ;;  %v351_v18 = vmul.f32 %v347_v12, %v347_v12  ;;  %v352_v19 = vmul.f32 %v348_v13, %v348_v13 }
  0xb1   : > { %v349_v20 = vsub.f32 %v325_v2, %v345_v16  ;;  %v350_v21 = vsub.f32 %v326_v5, %v346_v17  ;;  %v355_v22 = vsel %vm329_vm0, %v351_v18, 0.0  ;;  %v358_v23 = vsel %vm329_vm0, %v352_v19, 0.0 }
  0xb2   : > { %356 = vadd.xlane.f32.xlu0 %v355_v22 }
  0xb3   : > { %v353_v24 = vmul.f32 %v349_v20, %v349_v20  ;;  %v354_v25 = vmul.f32 %v350_v21, %v350_v21 }
  0xb5   : > { %v361_v26 = vsel %vm329_vm0, %v353_v24, 0.0  ;;  %v364_v27 = vsel %vm329_vm0, %v354_v25, 0.0 }
  0xb6   : > { %359 = vadd.xlane.f32.xlu0 %v358_v23  ;;  %362 = vadd.xlane.f32.xlu1 %v361_v26 }
  0xba   : > { %365 = vadd.xlane.f32.xlu1 %v364_v27 }
 0x13f   : > { %v357_v34 = vpop.xlane.xlu0 %356 }
 0x140   : > { %v367_v35 = vmul.f32 0.03125, %v357_v34 }
 0x142   : > { %v371_v36 = vadd.f32 1e-05, %v367_v35 }
 0x143   : > { %v363_v37 = vpop.xlane.xlu1 %362  ;;  %v360_v38 = vpop.xlane.xlu0 %359 }
 0x144   : > { %1319 = vrsqrt.f32 %v371_v36  ;;  %v369_v39 = vmul.f32 0.03125, %v363_v37  ;;  %v368_v40 = vmul.f32 0.03125, %v360_v38 }
 0x146   : > { %v373_v41 = vadd.f32 1e-05, %v369_v39  ;;  %v372_v42 = vadd.f32 1e-05, %v368_v40 }
 0x147   : > { %v366_v43 = vpop.xlane.xlu1 %365 }
 0x148   : > { %1321 = vrsqrt.f32 %v373_v41  ;;  %v370_v44 = vmul.f32 0.03125, %v366_v43 }
 0x149   : > { %1323 = vrsqrt.f32 %v372_v42 }
 0x14a   : > { %v374_v45 = vadd.f32 1e-05, %v370_v44 }
 0x14c   : > { %1325 = vrsqrt.f32 %v374_v45 }
 0x14e   : > { %v1320_v46 = vpop.eup %1319 }
 0x14f   : > { %v379_v48 = vmul.f32 %v1320_v46, %v347_v12 }
 0x151   : > { %v389_v50 = vmul.f32 %v1161_v47, %v379_v48 }
 0x152   : > { %v1322_v51 = vpop.eup %1321 }
 0x153   : > { %v1324_v52 = vpop.eup %1323  ;;  %v399_v53 = vadd.f32 %v1162_v49, %v389_v50  ;;  %v381_v54 = vmul.f32 %v1322_v51, %v349_v20 }
 0x154   : > { %v380_v55 = vmul.f32 %v1324_v52, %v348_v13 }
 0x155   : > { %1234 = vmatprep.mubr.msk.f32.mxu0 %vm329_vm0, %v399_v53  ;;  %v391_v56 = vmul.f32 %v1161_v47, %v381_v54 }
 0x156   : > { %v1326_v57 = vpop.eup %1325  ;;  %v390_v58 = vmul.f32 %v1161_v47, %v380_v55 }
 0x157   : > { %v401_v59 = vadd.f32 %v1162_v49, %v391_v56  ;;  %v382_v60 = vmul.f32 %v1326_v57, %v350_v21 }
 0x158   : > { %v400_v61 = vadd.f32 %v1162_v49, %v390_v58 }
 0x159   : > { %1237 = vmatprep.mubr.msk.f32.mxu1 %vm329_vm0, %v401_v59  ;;  %v392_v62 = vmul.f32 %v1161_v47, %v382_v60 }
 0x15a   : > { %1235 = vmatmul.mubr.msk.f32.vlgmr.msra.gmra.mrb[0].mxu0 %vm329_vm0, %v400_v61 }
 0x15b   : > { %v402_v63 = vadd.f32 %v1162_v49, %v392_v62 }
 0x15d   : > { %1238 = vmatmul.mubr.msk.f32.vlgmr.msra.gmra.mrb[0].mxu1 %vm329_vm0, %v402_v63 }
 0x22d   : > { %v1236_v1 = vpop.f32.mrb[0].mxu0 }
 0x22e   : > { %v498_v2 = vadd.f32 %v1236_v1, %v1163_v0  ;;  %v492_v3 = vpop.f32.mrb[1].mxu0 }
 0x22f   : > { %v493_v4 = vadd.f32 %v1163_v0, %v492_v3 }
 0x230   : > { %522 = vrot.lane.b32.xlu1 %v498_v2, %s1383_s18  ;;  %v1239_v5 = vpop.f32.mrb[0].mxu1  ;;  %513 = vst.msk [vmem:[%s1538_s19 + $0x8] sm:$0xff] %vm511_vm1, %v498_v2 }
 0x231   : > { %v508_v6 = vadd.f32 %v1239_v5, %v1163_v0  ;;  %520 = vrot.lane.b32.xlu0 %v493_v4, %s1383_s18  ;;  %v502_v7 = vpop.f32.mrb[1].mxu1  ;;  %512 = vst.msk [vmem:[%s1538_s19] sm:$0xff] %vm511_vm1, %v493_v4 }
 0x232   : > { %v503_v8 = vadd.f32 %v1163_v0, %v502_v7 }
 0x233   : > { %515 = vst.msk [vmem:[%s1538_s19 + $0x18] sm:$0xff] %vm511_vm1, %v508_v6 }
 0x234   : > { %526 = vrot.lane.b32.xlu1 %v508_v6, %s1383_s18  ;;  %514 = vst.msk [vmem:[%s1538_s19 + $0x10] sm:$0xff] %vm511_vm1, %v503_v8 }
 0x235   : > { %536 = vrot.lane.b32.xlu0 %v493_v4, %s1384_s24 }
 0x237   : > { %v784_v54 = vld [vmem:[%s1538_s19 + $0x8] sm:$0xff] (%p1478_p5) }
 0x238   : > { %538 = vrot.lane.b32.xlu1 %v498_v2, %s1384_s24  ;;  %v782_v53 = vld [vmem:[%s1538_s19] sm:$0xff] (%p1478_p5) }
 0x239   : > { %540 = vrot.lane.b32.xlu0 %v503_v8, %s1384_s24 }
 0x23a   : > { %v788_v56 = vld [vmem:[%s1538_s19 + $0x18] sm:$0xff] (%p1478_p5) }
 0x23b   : > { %v786_v55 = vld [vmem:[%s1538_s19 + $0x10] sm:$0xff] (%p1478_p5) }
 0x23c   : > { %542 = vrot.lane.b32.xlu1 %v508_v6, %s1384_s24  ;;  %s1552_s24 = scalar_lea.vmem [#allocation3], %s1531_s13 }
 0x23d   : > { %552 = vrot.lane.b32.xlu0 %v493_v4, %s1385_s20 }
 0x240   : > { %554 = vrot.lane.b32.xlu1 %v498_v2, %s1385_s20 }
 0x241   : > { %556 = vrot.lane.b32.xlu0 %v503_v8, %s1385_s20 }
 0x244   : > { %558 = vrot.lane.b32.xlu1 %v508_v6, %s1385_s20 }
 0x245   : > { %569 = vrot.lane.b32.xlu0 %v493_v4, %s1386_s21 }
 0x248   : > { %571 = vrot.lane.b32.xlu1 %v498_v2, %s1386_s21 }
 0x249   : > { %573 = vrot.lane.b32.xlu0 %v503_v8, %s1386_s21 }
 0x24c   : > { %575 = vrot.lane.b32.xlu1 %v508_v6, %s1386_s21 }
 0x24d   : > { %586 = vrot.lane.b32.xlu0 %v493_v4, %s1387_s22 }
 0x250   : > { %588 = vrot.lane.b32.xlu1 %v498_v2, %s1387_s22 }
 0x251   : > { %590 = vrot.lane.b32.xlu0 %v503_v8, %s1387_s22 }
 0x254   : > { %592 = vrot.lane.b32.xlu1 %v508_v6, %s1387_s22 }
 0x255   : > { %603 = vrot.lane.b32.xlu0 %v493_v4, %s1388_s23 }
 0x258   : > { %605 = vrot.lane.b32.xlu1 %v498_v2, %s1388_s23 }
 0x259   : > { %607 = vrot.lane.b32.xlu0 %v503_v8, %s1388_s23 }
 0x25c   : > { %609 = vrot.lane.b32.xlu1 %v508_v6, %s1388_s23 }
 0x25d   : > { %620 = vrot.lane.b32.xlu0 %v493_v4, %s1389_s10 }
 0x260   : > { %622 = vrot.lane.b32.xlu1 %v498_v2, %s1389_s10 }
 0x261   : > { %624 = vrot.lane.b32.xlu0 %v503_v8, %s1389_s10 }
 0x264   : > { %626 = vrot.lane.b32.xlu1 %v508_v6, %s1389_s10 }
 0x265   : > { %637 = vrot.lane.b32.xlu0 %v493_v4, %s1390_s11 }
 0x268   : > { %639 = vrot.lane.b32.xlu1 %v498_v2, %s1390_s11 }
 0x269   : > { %641 = vrot.lane.b32.xlu0 %v503_v8, %s1390_s11 }
 0x26c   : > { %643 = vrot.lane.b32.xlu1 %v508_v6, %s1390_s11 }
 0x26d   : > { %654 = vrot.lane.b32.xlu0 %v493_v4, %s1391_s26 }
 0x270   : > { %656 = vrot.lane.b32.xlu1 %v498_v2, %s1391_s26 }
 0x271   : > { %658 = vrot.lane.b32.xlu0 %v503_v8, %s1391_s26 }
 0x274   : > { %660 = vrot.lane.b32.xlu1 %v508_v6, %s1391_s26 }
 0x275   : > { %671 = vrot.lane.b32.xlu0 %v493_v4, %s1392_s14 }
 0x278   : > { %673 = vrot.lane.b32.xlu1 %v498_v2, %s1392_s14 }
 0x279   : > { %675 = vrot.lane.b32.xlu0 %v503_v8, %s1392_s14 }
 0x27c   : > { %677 = vrot.lane.b32.xlu1 %v508_v6, %s1392_s14 }
 0x27d   : > { %688 = vrot.lane.b32.xlu0 %v493_v4, %s1393_s15 }
 0x280   : > { %690 = vrot.lane.b32.xlu1 %v498_v2, %s1393_s15 }
 0x281   : > { %692 = vrot.lane.b32.xlu0 %v503_v8, %s1393_s15 }
 0x284   : > { %524 = vrot.lane.b32.xlu1 %v503_v8, %s1383_s18  ;;  %s1561_s18 = scalar_lea.vmem [#allocation4], %s1531_s13  ;;  %s1208_s13 = sshll.u32 (%p1478_p5), %s1369_s27, 5 }
 0x285   : > { %s722_s20 = sadd.s32 (%p1478_p5), %s1208_s13, %s1491_s17 }
 0x286   : > { %s1209_s21 = sshll.u32 (%p1478_p5), %s722_s20, 3 }
 0x287   : > { %s724_s10 = scalar_lea.vmem (%p1478_p5), %s1740_s5, %s1209_s21 }
 0x288   : > { %694 = vrot.lane.b32.xlu1 %v508_v6, %s1393_s15  ;;  %783 = vst [vmem:[%s724_s10] sm:$0xff] (%p1478_p5), %v782_v53  ;;  %785 = vst [vmem:[%s724_s10 + $0x8] sm:$0xff] (%p1478_p5), %v784_v54 }
 0x289   : > { %787 = vst [vmem:[%s724_s10 + $0x10] sm:$0xff] (%p1478_p5), %v786_v55  ;;  %789 = vst [vmem:[%s724_s10 + $0x18] sm:$0xff] (%p1478_p5), %v788_v56 }
 0x2a2   : > { %v523_v9 = vpop.permute.xlu1 %522 }
 0x2a3   : > { %533 = vst.msk [vmem:[%s1552_s24 + $0x8] sm:$0xff] %vm511_vm1, %v523_v9  ;;  %v521_v10 = vpop.permute.xlu0 %520 }
 0x2a4   : > { %532 = vst.msk [vmem:[%s1552_s24] sm:$0xff] %vm511_vm1, %v521_v10 }
 0x2a6   : > { %v527_v11 = vpop.permute.xlu1 %526 }
 0x2a7   : > { %535 = vst.msk [vmem:[%s1552_s24 + $0x18] sm:$0xff] %vm511_vm1, %v527_v11  ;;  %v537_v12 = vpop.permute.xlu0 %536 }
 0x2a8   : > { %548 = vst.msk [vmem:[%s1561_s18] sm:$0xff] %vm511_vm1, %v537_v12 }
 0x2aa   : > { %v539_v13 = vpop.permute.xlu1 %538 }
 0x2ab   : > { %549 = vst.msk [vmem:[%s1561_s18 + $0x8] sm:$0xff] %vm511_vm1, %v539_v13  ;;  %v541_v14 = vpop.permute.xlu0 %540 }
 0x2ac   : > { %550 = vst.msk [vmem:[%s1561_s18 + $0x10] sm:$0xff] %vm511_vm1, %v541_v14 }
 0x2ae   : > { %v543_v15 = vpop.permute.xlu1 %542 }
 0x2af   : > { %551 = vst.msk [vmem:[%s1561_s18 + $0x18] sm:$0xff] %vm511_vm1, %v543_v15  ;;  %v553_v16 = vpop.permute.xlu0 %552 }
 0x2b0   : > { %1168 = vst.msk [vmem:[%s1538_s19 + $0x20] sm:$0xff] %vm511_vm1, %v553_v16 }
 0x2b2   : > { %v555_v17 = vpop.permute.xlu1 %554 }
 0x2b3   : > { %1169 = vst.msk [vmem:[%s1538_s19 + $0x28] sm:$0xff] %vm511_vm1, %v555_v17  ;;  %v557_v18 = vpop.permute.xlu0 %556 }
 0x2b4   : > { %1170 = vst.msk [vmem:[%s1538_s19 + $0x30] sm:$0xff] %vm511_vm1, %v557_v18 }
 0x2b6   : > { %v559_v19 = vpop.permute.xlu1 %558 }
 0x2b7   : > { %1171 = vst.msk [vmem:[%s1538_s19 + $0x38] sm:$0xff] %vm511_vm1, %v559_v19  ;;  %v570_v20 = vpop.permute.xlu0 %569  ;;  %v790_v57 = vld [vmem:[%s1538_s19 + $0x20] sm:$0xff] (%p1478_p5) }
 0x2b8   : > { %1172 = vst.msk [vmem:[%s1552_s24 + $0x20] sm:$0xff] %vm511_vm1, %v570_v20  ;;  %791 = vst [vmem:[%s724_s10 + $0x40] sm:$0xff] (%p1478_p5), %v790_v57 }
 0x2ba   : > { %v572_v21 = vpop.permute.xlu1 %571  ;;  %v792_v58 = vld [vmem:[%s1538_s19 + $0x28] sm:$0xff] (%p1478_p5) }
 0x2bb   : > { %1173 = vst.msk [vmem:[%s1552_s24 + $0x28] sm:$0xff] %vm511_vm1, %v572_v21  ;;  %v574_v22 = vpop.permute.xlu0 %573  ;;  %v794_v59 = vld [vmem:[%s1538_s19 + $0x30] sm:$0xff] (%p1478_p5)  ;;  %793 = vst [vmem:[%s724_s10 + $0x48] sm:$0xff] (%p1478_p5), %v792_v58 }
 0x2bc   : > { %1174 = vst.msk [vmem:[%s1552_s24 + $0x30] sm:$0xff] %vm511_vm1, %v574_v22  ;;  %795 = vst [vmem:[%s724_s10 + $0x50] sm:$0xff] (%p1478_p5), %v794_v59 }
 0x2be   : > { %v576_v23 = vpop.permute.xlu1 %575  ;;  %v796_v60 = vld [vmem:[%s1538_s19 + $0x38] sm:$0xff] (%p1478_p5) }
 0x2bf   : > { %1175 = vst.msk [vmem:[%s1552_s24 + $0x38] sm:$0xff] %vm511_vm1, %v576_v23  ;;  %v587_v24 = vpop.permute.xlu0 %586  ;;  %797 = vst [vmem:[%s724_s10 + $0x58] sm:$0xff] (%p1478_p5), %v796_v60 }
 0x2c0   : > { %1176 = vst.msk [vmem:[%s1561_s18 + $0x20] sm:$0xff] %vm511_vm1, %v587_v24 }
 0x2c2   : > { %v589_v25 = vpop.permute.xlu1 %588 }
 0x2c3   : > { %1177 = vst.msk [vmem:[%s1561_s18 + $0x28] sm:$0xff] %vm511_vm1, %v589_v25  ;;  %v591_v26 = vpop.permute.xlu0 %590 }
 0x2c4   : > { %1178 = vst.msk [vmem:[%s1561_s18 + $0x30] sm:$0xff] %vm511_vm1, %v591_v26 }
 0x2c6   : > { %v593_v27 = vpop.permute.xlu1 %592 }
 0x2c7   : > { %1179 = vst.msk [vmem:[%s1561_s18 + $0x38] sm:$0xff] %vm511_vm1, %v593_v27  ;;  %v604_v28 = vpop.permute.xlu0 %603 }
 0x2c8   : > { %1180 = vst.msk [vmem:[%s1538_s19 + $0x40] sm:$0xff] %vm511_vm1, %v604_v28 }
 0x2ca   : > { %v606_v29 = vpop.permute.xlu1 %605 }
 0x2cb   : > { %1181 = vst.msk [vmem:[%s1538_s19 + $0x48] sm:$0xff] %vm511_vm1, %v606_v29  ;;  %v608_v30 = vpop.permute.xlu0 %607 }
 0x2cc   : > { %1182 = vst.msk [vmem:[%s1538_s19 + $0x50] sm:$0xff] %vm511_vm1, %v608_v30 }
 0x2ce   : > { %v610_v31 = vpop.permute.xlu1 %609 }
 0x2cf   : > { %1183 = vst.msk [vmem:[%s1538_s19 + $0x58] sm:$0xff] %vm511_vm1, %v610_v31  ;;  %v621_v32 = vpop.permute.xlu0 %620  ;;  %v798_v61 = vld [vmem:[%s1538_s19 + $0x40] sm:$0xff] (%p1478_p5) }
 0x2d0   : > { %1184 = vst.msk [vmem:[%s1552_s24 + $0x40] sm:$0xff] %vm511_vm1, %v621_v32  ;;  %799 = vst [vmem:[%s724_s10 + $0x80] sm:$0xff] (%p1478_p5), %v798_v61 }
 0x2d2   : > { %v623_v33 = vpop.permute.xlu1 %622  ;;  %v800_v62 = vld [vmem:[%s1538_s19 + $0x48] sm:$0xff] (%p1478_p5) }
 0x2d3   : > { %1185 = vst.msk [vmem:[%s1552_s24 + $0x48] sm:$0xff] %vm511_vm1, %v623_v33  ;;  %v625_v34 = vpop.permute.xlu0 %624  ;;  %v802_v63 = vld [vmem:[%s1538_s19 + $0x50] sm:$0xff] (%p1478_p5)  ;;  %801 = vst [vmem:[%s724_s10 + $0x88] sm:$0xff] (%p1478_p5), %v800_v62 }
 0x2d4   : > { %1186 = vst.msk [vmem:[%s1552_s24 + $0x50] sm:$0xff] %vm511_vm1, %v625_v34  ;;  %803 = vst [vmem:[%s724_s10 + $0x90] sm:$0xff] (%p1478_p5), %v802_v63 }
 0x2d6   : > { %v627_v35 = vpop.permute.xlu1 %626  ;;  %v804_v0 = vld [vmem:[%s1538_s19 + $0x58] sm:$0xff] (%p1478_p5) }
 0x2d7   : > { %1187 = vst.msk [vmem:[%s1552_s24 + $0x58] sm:$0xff] %vm511_vm1, %v627_v35  ;;  %v638_v36 = vpop.permute.xlu0 %637  ;;  %805 = vst [vmem:[%s724_s10 + $0x98] sm:$0xff] (%p1478_p5), %v804_v0 }
 0x2d8   : > { %1188 = vst.msk [vmem:[%s1561_s18 + $0x40] sm:$0xff] %vm511_vm1, %v638_v36 }
 0x2da   : > { %v640_v37 = vpop.permute.xlu1 %639 }
 0x2db   : > { %1189 = vst.msk [vmem:[%s1561_s18 + $0x48] sm:$0xff] %vm511_vm1, %v640_v37  ;;  %v642_v38 = vpop.permute.xlu0 %641 }
 0x2dc   : > { %1190 = vst.msk [vmem:[%s1561_s18 + $0x50] sm:$0xff] %vm511_vm1, %v642_v38 }
 0x2de   : > { %v644_v39 = vpop.permute.xlu1 %643 }
 0x2df   : > { %1191 = vst.msk [vmem:[%s1561_s18 + $0x58] sm:$0xff] %vm511_vm1, %v644_v39  ;;  %v655_v40 = vpop.permute.xlu0 %654 }
 0x2e0   : > { %1192 = vst.msk [vmem:[%s1538_s19 + $0x60] sm:$0xff] %vm511_vm1, %v655_v40 }
 0x2e2   : > { %v657_v41 = vpop.permute.xlu1 %656 }
 0x2e3   : > { %1193 = vst.msk [vmem:[%s1538_s19 + $0x68] sm:$0xff] %vm511_vm1, %v657_v41  ;;  %v659_v42 = vpop.permute.xlu0 %658 }
 0x2e4   : > { %1194 = vst.msk [vmem:[%s1538_s19 + $0x70] sm:$0xff] %vm511_vm1, %v659_v42 }
 0x2e6   : > { %v661_v43 = vpop.permute.xlu1 %660 }
 0x2e7   : > { %1195 = vst.msk [vmem:[%s1538_s19 + $0x78] sm:$0xff] %vm511_vm1, %v661_v43  ;;  %v672_v44 = vpop.permute.xlu0 %671  ;;  %v806_v1 = vld [vmem:[%s1538_s19 + $0x60] sm:$0xff] (%p1478_p5) }
 0x2e8   : > { %1196 = vst.msk [vmem:[%s1552_s24 + $0x60] sm:$0xff] %vm511_vm1, %v672_v44  ;;  %807 = vst [vmem:[%s724_s10 + $0xc0] sm:$0xff] (%p1478_p5), %v806_v1 }
 0x2ea   : > { %v674_v45 = vpop.permute.xlu1 %673  ;;  %v808_v2 = vld [vmem:[%s1538_s19 + $0x68] sm:$0xff] (%p1478_p5) }
 0x2eb   : > { %1197 = vst.msk [vmem:[%s1552_s24 + $0x68] sm:$0xff] %vm511_vm1, %v674_v45  ;;  %v676_v46 = vpop.permute.xlu0 %675  ;;  %v810_v3 = vld [vmem:[%s1538_s19 + $0x70] sm:$0xff] (%p1478_p5)  ;;  %809 = vst [vmem:[%s724_s10 + $0xc8] sm:$0xff] (%p1478_p5), %v808_v2 }
 0x2ec   : > { %1198 = vst.msk [vmem:[%s1552_s24 + $0x70] sm:$0xff] %vm511_vm1, %v676_v46  ;;  %811 = vst [vmem:[%s724_s10 + $0xd0] sm:$0xff] (%p1478_p5), %v810_v3 }
 0x2ee   : > { %v678_v47 = vpop.permute.xlu1 %677  ;;  %v812_v4 = vld [vmem:[%s1538_s19 + $0x78] sm:$0xff] (%p1478_p5) }
 0x2ef   : > { %1199 = vst.msk [vmem:[%s1552_s24 + $0x78] sm:$0xff] %vm511_vm1, %v678_v47  ;;  %v689_v48 = vpop.permute.xlu0 %688  ;;  %813 = vst [vmem:[%s724_s10 + $0xd8] sm:$0xff] (%p1478_p5), %v812_v4 }
 0x2f0   : > { %1200 = vst.msk [vmem:[%s1561_s18 + $0x60] sm:$0xff] %vm511_vm1, %v689_v48 }
 0x2f2   : > { %v691_v49 = vpop.permute.xlu1 %690 }
 0x2f3   : > { %1201 = vst.msk [vmem:[%s1561_s18 + $0x68] sm:$0xff] %vm511_vm1, %v691_v49  ;;  %v693_v50 = vpop.permute.xlu0 %692 }
 0x2f4   : > { %1202 = vst.msk [vmem:[%s1561_s18 + $0x70] sm:$0xff] %vm511_vm1, %v693_v50 }
 0x2f5   : > { %719 = sbr.rel (!%p1478_p5) target bundleno = 764 (0x2fc), region = 44 }
 0x2f6   : > { %v525_v51 = vpop.permute.xlu1 %524 }
 0x2f7   : > { %534 = vst.msk [vmem:[%s1552_s24 + $0x10] sm:$0xff] %vm511_vm1, %v525_v51 }
 0x2fa   : > { %v695_v52 = vpop.permute.xlu1 %694 }
 0x2fb   : > { %1203 = vst.msk [vmem:[%s1561_s18 + $0x78] sm:$0xff] %vm511_vm1, %v695_v52 }
 0x2fc PF: > { %819 = sbr.rel (!%p1478_p5) target bundleno = 776 (0x308), region = 82  ;;  %s1211_s19 = sshll.u32 (%p1478_p5), %s1369_s27, 5  ;;  %v882_v5 = vld [vmem:[%s1552_s24] sm:$0xff] (%p1478_p5)  ;;  %v884_v6 = vld [vmem:[%s1552_s24 + $0x8] sm:$0xff] (%p1478_p5)  ;;  %v888_v8 = vld [vmem:[%s1552_s24 + $0x18] sm:$0xff] (%p1478_p5) }
 0x2fd   : > { %s822_s11 = sadd.s32 (%p1478_p5), %s1211_s19, %s1491_s17  ;;  %v890_v9 = vld [vmem:[%s1552_s24 + $0x20] sm:$0xff] (%p1478_p5)  ;;  %v892_v10 = vld [vmem:[%s1552_s24 + $0x28] sm:$0xff] (%p1478_p5)  ;;  %v894_v11 = vld [vmem:[%s1552_s24 + $0x30] sm:$0xff] (%p1478_p5) }
 0x2fe   : > { %v886_v7 = vld [vmem:[%s1552_s24 + $0x10] sm:$0xff] (%p1478_p5)  ;;  %s1212_s26 = sshll.u32 (%p1478_p5), %s822_s11, 3  ;;  %v896_v12 = vld [vmem:[%s1552_s24 + $0x38] sm:$0xff] (%p1478_p5)  ;;  %v898_v13 = vld [vmem:[%s1552_s24 + $0x40] sm:$0xff] (%p1478_p5) }
 0x2ff   : > { %s824_s13 = scalar_lea.vmem (%p1478_p5), %s1741_s6, %s1212_s26  ;;  %v900_v14 = vld [vmem:[%s1552_s24 + $0x48] sm:$0xff] (%p1478_p5)  ;;  %v902_v15 = vld [vmem:[%s1552_s24 + $0x50] sm:$0xff] (%p1478_p5)  ;;  %v904_v16 = vld [vmem:[%s1552_s24 + $0x58] sm:$0xff] (%p1478_p5) }
 0x300   : > { %883 = vst [vmem:[%s824_s13] sm:$0xff] (%p1478_p5), %v882_v5  ;;  %885 = vst [vmem:[%s824_s13 + $0x8] sm:$0xff] (%p1478_p5), %v884_v6  ;;  %v906_v17 = vld [vmem:[%s1552_s24 + $0x60] sm:$0xff] (%p1478_p5)  ;;  %v908_v18 = vld [vmem:[%s1552_s24 + $0x68] sm:$0xff] (%p1478_p5) }
 0x301   : > { %887 = vst [vmem:[%s824_s13 + $0x10] sm:$0xff] (%p1478_p5), %v886_v7  ;;  %889 = vst [vmem:[%s824_s13 + $0x18] sm:$0xff] (%p1478_p5), %v888_v8  ;;  %v910_v19 = vld [vmem:[%s1552_s24 + $0x70] sm:$0xff] (%p1478_p5)  ;;  %v912_v20 = vld [vmem:[%s1552_s24 + $0x78] sm:$0xff] (%p1478_p5) }
 0x302   : > { %891 = vst [vmem:[%s824_s13 + $0x40] sm:$0xff] (%p1478_p5), %v890_v9  ;;  %893 = vst [vmem:[%s824_s13 + $0x48] sm:$0xff] (%p1478_p5), %v892_v10 }
 0x303   : > { %895 = vst [vmem:[%s824_s13 + $0x50] sm:$0xff] %v894_v11  ;;  %897 = vst [vmem:[%s824_s13 + $0x58] sm:$0xff] %v896_v12 }
 0x304   : > { %899 = vst [vmem:[%s824_s13 + $0x80] sm:$0xff] %v898_v13  ;;  %901 = vst [vmem:[%s824_s13 + $0x88] sm:$0xff] %v900_v14 }
 0x305   : > { %903 = vst [vmem:[%s824_s13 + $0x90] sm:$0xff] %v902_v15  ;;  %905 = vst [vmem:[%s824_s13 + $0x98] sm:$0xff] %v904_v16 }
 0x306   : > { %907 = vst [vmem:[%s824_s13 + $0xc0] sm:$0xff] %v906_v17  ;;  %909 = vst [vmem:[%s824_s13 + $0xc8] sm:$0xff] %v908_v18 }
 0x307   : > { %911 = vst [vmem:[%s824_s13 + $0xd0] sm:$0xff] %v910_v19  ;;  %913 = vst [vmem:[%s824_s13 + $0xd8] sm:$0xff] %v912_v20 }
 0x308 PF: > { %919 = sbr.rel (!%p1478_p5) target bundleno = 788 (0x314), region = 120  ;;  %s1214_s24 = sshll.u32 (%p1478_p5), %s1369_s27, 5  ;;  %v982_v21 = vld [vmem:[%s1561_s18] sm:$0xff] (%p1478_p5)  ;;  %v984_v22 = vld [vmem:[%s1561_s18 + $0x8] sm:$0xff] (%p1478_p5)  ;;  %v986_v23 = vld [vmem:[%s1561_s18 + $0x10] sm:$0xff] (%p1478_p5) }
 0x309   : > { %s922_s12 = sadd.s32 (%p1478_p5), %s1214_s24, %s1491_s17  ;;  %v988_v24 = vld [vmem:[%s1561_s18 + $0x18] sm:$0xff] (%p1478_p5)  ;;  %v990_v25 = vld [vmem:[%s1561_s18 + $0x20] sm:$0xff] (%p1478_p5)  ;;  %v992_v26 = vld [vmem:[%s1561_s18 + $0x28] sm:$0xff] (%p1478_p5) }
 0x30a   : > { %s1215_s20 = sshll.u32 (%p1478_p5), %s922_s12, 3  ;;  %v994_v27 = vld [vmem:[%s1561_s18 + $0x30] sm:$0xff] (%p1478_p5)  ;;  %v996_v28 = vld [vmem:[%s1561_s18 + $0x38] sm:$0xff] (%p1478_p5)  ;;  %v998_v29 = vld [vmem:[%s1561_s18 + $0x40] sm:$0xff] (%p1478_p5) }
 0x30b   : > { %s924_s23 = scalar_lea.vmem (%p1478_p5), %s1742_s7, %s1215_s20  ;;  %v1000_v30 = vld [vmem:[%s1561_s18 + $0x48] sm:$0xff] (%p1478_p5)  ;;  %v1002_v31 = vld [vmem:[%s1561_s18 + $0x50] sm:$0xff] (%p1478_p5)  ;;  %v1004_v32 = vld [vmem:[%s1561_s18 + $0x58] sm:$0xff] (%p1478_p5) }
 0x30c   : > { %983 = vst [vmem:[%s924_s23] sm:$0xff] (%p1478_p5), %v982_v21  ;;  %985 = vst [vmem:[%s924_s23 + $0x8] sm:$0xff] (%p1478_p5), %v984_v22  ;;  %v1006_v33 = vld [vmem:[%s1561_s18 + $0x60] sm:$0xff] (%p1478_p5)  ;;  %v1008_v34 = vld [vmem:[%s1561_s18 + $0x68] sm:$0xff] (%p1478_p5) }
 0x30d   : > { %987 = vst [vmem:[%s924_s23 + $0x10] sm:$0xff] (%p1478_p5), %v986_v23  ;;  %989 = vst [vmem:[%s924_s23 + $0x18] sm:$0xff] (%p1478_p5), %v988_v24  ;;  %v1010_v35 = vld [vmem:[%s1561_s18 + $0x70] sm:$0xff] (%p1478_p5)  ;;  %v1012_v36 = vld [vmem:[%s1561_s18 + $0x78] sm:$0xff] (%p1478_p5) }
 0x30e   : > { %991 = vst [vmem:[%s924_s23 + $0x40] sm:$0xff] (%p1478_p5), %v990_v25  ;;  %993 = vst [vmem:[%s924_s23 + $0x48] sm:$0xff] (%p1478_p5), %v992_v26 }
 0x30f   : > { %995 = vst [vmem:[%s924_s23 + $0x50] sm:$0xff] %v994_v27  ;;  %997 = vst [vmem:[%s924_s23 + $0x58] sm:$0xff] %v996_v28 }
 0x310   : > { %999 = vst [vmem:[%s924_s23 + $0x80] sm:$0xff] %v998_v29  ;;  %1001 = vst [vmem:[%s924_s23 + $0x88] sm:$0xff] %v1000_v30 }
 0x311   : > { %1003 = vst [vmem:[%s924_s23 + $0x90] sm:$0xff] %v1002_v31  ;;  %1005 = vst [vmem:[%s924_s23 + $0x98] sm:$0xff] %v1004_v32 }
 0x312   : > { %1007 = vst [vmem:[%s924_s23 + $0xc0] sm:$0xff] %v1006_v33  ;;  %1009 = vst [vmem:[%s924_s23 + $0xc8] sm:$0xff] %v1008_v34 }
 0x313   : > { %1011 = vst [vmem:[%s924_s23 + $0xd0] sm:$0xff] %v1010_v35  ;;  %1013 = vst [vmem:[%s924_s23 + $0xd8] sm:$0xff] %v1012_v36 }
 0x314 PF: > { %s18_s30 = sadd.s32 1, %s1381_s30   ;;  %s1744_s24 = smov %s1361_s25 }
 0x315   : > { %p15_p11 = scmp.ge.s32.totalorder %s18_s30, 6   ;;  %s1745_s25 = smov %s1489_s16 }
 0x316   : > { %s1746_s26 = smov %s1373_s28  ;;  %s1747_s27 = smov %s1377_s29 }
 0x317   : > { %s1748_s28 = smov %s1751_s8  ;;  %s1749_s29 = smov %s1755_s9 }
 0x318   :  { %17 = sbr.rel (!%p15_p11) target bundleno = 4 (0x4), region = 217 }

// kernel: tpu_custom_call.1
= control target key start
LH: loop header
LB: loop body
LE: loop exit
PB: predicated region body
PF: predicated region fallthrough
CT: control target
= control target key end

     0   :  { %s1434_s24 = smov 0   ;;  %s1436_s25 = smov 0   ;;  %s1735_s0 = inlined_call_operand.vmem [shape: f32[2,64,32], index: 0, kind: input, shape index: {}]   ;;  %s1736_s1 = inlined_call_operand.vmem [shape: f32[1,32], index: 1, kind: input, shape index: {}]   ;;  %s1737_s2 = inlined_call_operand.vmem [shape: f32[1,32], index: 2, kind: input, shape index: {}]   ;;  %s1738_s3 = inlined_call_operand.vmem [shape: f32[32,96], index: 3, kind: input, shape index: {}]   ;;  %s1739_s4 = inlined_call_operand.vmem [shape: f32[1,96], index: 4, kind: input, shape index: {}]   ;;  %s1740_s5 = inlined_call_operand.vmem [shape: f32[2,4,64,8], index: 5, kind: output, shape index: {0}]   ;;  %s1741_s6 = inlined_call_operand.vmem [shape: f32[2,4,64,8], index: 6, kind: output, shape index: {1}]   ;;  %s1742_s7 = inlined_call_operand.vmem [shape: f32[2,4,64,8], index: 7, kind: output, shape index: {2}]  }
   0x1   :  { %s1438_s26 = smov 0   ;;  %s1440_s27 = smov 0  }
   0x2   :  { %s1442_s28 = smov 0   ;;  %s1444_s29 = smov 0  }
   0x3   :  { %s1446_s30 = smov 0  }
   0x4 LB: > { %s27_s8 = sadd.s32 1, %s1373_s28  ;;  %s30_s9 = sadd.s32 1, %s1377_s29  ;;  %s1381_s30 = sphi %s1446_s30, %s18_s30   ;;  %s1377_s29 = sphi %s1444_s29, %s1749_s29   ;;  %s1373_s28 = sphi %s1442_s28, %s1748_s28   ;;  %s1369_s27 = sphi %s1440_s27, %s1747_s27   ;;  %s1365_s26 = sphi %s1438_s26, %s1746_s26   ;;  %s1361_s25 = sphi %s1436_s25, %s1745_s25   ;;  %s1357_s24 = sphi %s1434_s24, %s1744_s24  }
   0x5   : > { %p28_p0 = scmp.ge.s32.totalorder %s27_s8, 2  ;;  %s1150_s10 = sadd.s32 4294967295, %s1381_s30  }
   0x6   : > { %p161_p1 = scmp.ne.s32.totalorder %s1361_s25, %s1357_s24  ;;  %p162_p2 = scmp.eq.s32.totalorder %s1150_s10, 3 }
   0x7   : > { %s1751_s8 = smov (%p28_p0, %s27_s8), 0  ;;  %s1753_s9 = smov (!%p28_p0, %s30_s9), %s1377_s29 }
   0x8   : > { %s147_s11 = ssub.s32 %s1373_s28, %s1751_s8  ;;  %p32_p3 = scmp.ge.s32.totalorder %s1753_s9, 2 }
   0x9   : > { %p1154_p4 = scmp.ge.s32.totalorder %s1381_s30, 1  ;;  %p1478_p5 = por %p162_p2, %p161_p1 }
   0xa   : > { %p267_p6 = scmp.lt.s32.totalorder %s1381_s30, 5  ;;  %s1755_s9 = smov (%p32_p3, %s1753_s9), 0 }
   0xb   : > { %s146_s13 = ssub.s32 %s1377_s29, %s1755_s9  ;;  %s151_s15 = sadd.s32 1, %s1361_s25 }
   0xc   : > { %p268_p7 = pnand %p1154_p4, %p267_p6  ;;  %s148_s14 = sor.u32 %s147_s11, %s146_s13 }
   0xd   : > { %p149_p8 = scmp.eq.s32.totalorder %s148_s14, 0  ;;  %s1491_s17 = sshll.u32 (!%p268_p7), %s1365_s26, 2  ;;  %vm329_vm0 = vcmask (!%p268_p7), 261120   ;;  %v403_v28 = vld [vmem:[%s1738_s3] sm:$0xff] (!%p268_p7)  ;;  %v404_v29 = vld [vmem:[%s1738_s3 + $0x8] sm:$0xff] (!%p268_p7)  ;;  %v405_v30 = vld [vmem:[%s1738_s3 + $0x10] sm:$0xff] (!%p268_p7) }
   0xe   : > { %271 = sbr.rel (%p268_p7) target bundleno = 788 (0x314), region = 40  ;;  %p311_p9 = scmp.lt.s32.totalorder (!%p268_p7), %s1369_s27, 1  ;;  %v1240_v31 = vpack.c.bf16 (!%p268_p7), %v404_v29, %v403_v28  ;;  %v406_v32 = vld [vmem:[%s1738_s3 + $0x18] sm:$0xff] (!%p268_p7)  ;;  %v1161_v47 = vld [vmem:[%s1736_s1] ss:$0 sm:$0xff] (!%p268_p7)  ;;  %vm511_vm1 = vcmask (!%p268_p7), 64512  }
   0xf   : > { %s1489_s16 = scalar_select %p149_p8, %s1361_s25, %s151_s15  }
  0x10   : > { %p313_p10 = scmp.lt.s32.totalorder (!%p268_p7), %s1491_s17, 7  ;;  %v1244_v33 = vpack.c.bf16 (!%p268_p7), %v406_v32, %v405_v30  ;;  %1241 = vmatprep.subr.bf16.mxu0 (!%p268_p7), %v1240_v31  ;;  %1248 = vmatprep.subr.bf16.mxu1 (!%p268_p7), %v1240_v31  ;;  %v1162_v49 = vld [vmem:[%s1737_s2] ss:$0 sm:$0xff] (!%p268_p7)  ;;  %s295_s26 = sand.u32 (!%p268_p7), 1, %s1357_s24  }
  0x11   : > { %1243 = vmatpush3.bf16.msra.mxu0 (!%p268_p7), %v1240_v31  ;;  %1250 = vmatpush3.bf16.msra.mxu1 (!%p268_p7), %v1240_v31  ;;  %s1531_s13 = sshll.u32 (!%p268_p7), %s295_s26, 7  ;;  %s1384_s24 = smov (!%p268_p7), 64  }
  0x12   : > { %1245 = vmatprep.subr.bf16.mxu0 (!%p268_p7), %v1244_v33  ;;  %1249 = vmatprep.subr.bf16.mxu1 (!%p268_p7), %v1244_v33  ;;  %s1388_s23 = smov (!%p268_p7), 112   ;;  %s1389_s10 = smov (!%p268_p7), 80  }
  0x13   : > { %s1391_s26 = smov (!%p268_p7), 104   ;;  %s1392_s14 = smov (!%p268_p7), 72  }
  0x14   : > { %s1393_s15 = smov (!%p268_p7), 40  }
  0x15   : > { %s312_s18 = scalar_select %p311_p9, %s1369_s27, 1  ;;  %1247 = vmatpush3.bf16.msra.mxu0 %v1244_v33  ;;  %1251 = vmatpush3.bf16.msra.mxu1 %v1244_v33 }
  0x16   : > { %s314_s19 = scalar_select %p313_p10, %s1491_s17, 7 }
  0x17   : > { %s1159_s20 = sshll.u32 %s312_s18, 3  ;;  %s1383_s18 = smov 96  }
  0x18   : > { %s316_s21 = sadd.s32 %s1159_s20, %s314_s19  ;;  %s1538_s19 = scalar_lea.vmem [#allocation2], %s1531_s13 }
  0x19   : > { %s1160_s22 = sshll.u32 %s316_s21, 3  ;;  %s1385_s20 = smov 120  }
  0x1a   : > { %s318_s11 = scalar_lea.vmem %s1735_s0, %s1160_s22  ;;  %s1386_s21 = smov 88  }
  0x1b   : > { %v323_v0 = vld [vmem:[%s318_s11] sm:$0xff]  ;;  %v324_v1 = vld [vmem:[%s318_s11 + $0x8] sm:$0xff]  ;;  %v325_v2 = vld [vmem:[%s318_s11 + $0x10] sm:$0xff]  ;;  %s1387_s22 = smov 56  }
  0x1c   : > { %v330_v3 = vsel %vm329_vm0, %v323_v0, 0.0  ;;  %v333_v4 = vsel %vm329_vm0, %v324_v1, 0.0  ;;  %v326_v5 = vld [vmem:[%s318_s11 + $0x18] sm:$0xff]  ;;  %v336_v6 = vsel %vm329_vm0, %v325_v2, 0.0  ;;  %s1390_s11 = smov 48  }
  0x1d   : > { %331 = vadd.xlane.f32.xlu0 %v330_v3  ;;  %334 = vadd.xlane.f32.xlu1 %v333_v4  ;;  %v339_v7 = vsel %vm329_vm0, %v326_v5, 0.0 }
  0x21   : > { %337 = vadd.xlane.f32.xlu0 %v336_v6  ;;  %340 = vadd.xlane.f32.xlu1 %v339_v7 }
  0xaa   : > { %v332_v8 = vpop.xlane.xlu0 %331  ;;  %v335_v9 = vpop.xlane.xlu1 %334 }
  0xab   : > { %v343_v10 = vmul.f32 0.03125, %v332_v8  ;;  %v344_v11 = vmul.f32 0.03125, %v335_v9 }
  0xad   : > { %v347_v12 = vsub.f32 %v323_v0, %v343_v10  ;;  %v348_v13 = vsub.f32 %v324_v1, %v344_v11  ;;  %v1163_v0 = vld [vmem:[%s1739_s4] ss:$0 sm:$0xff] }
  0xae   : > { %v338_v14 = vpop.xlane.xlu0 %337  ;;  %v341_v15 = vpop.xlane.xlu1 %340 }
  0xaf   : > { %v345_v16 = vmul.f32 0.03125, %v338_v14  ;;  %v346_v17 = vmul.f32 0.03125, %v341_v15  ;;  %v351_v18 = vmul.f32 %v347_v12, %v347_v12  ;;  %v352_v19 = vmul.f32 %v348_v13, %v348_v13 }
  0xb1   : > { %v349_v20 = vsub.f32 %v325_v2, %v345_v16  ;;  %v350_v21 = vsub.f32 %v326_v5, %v346_v17  ;;  %v355_v22 = vsel %vm329_vm0, %v351_v18, 0.0  ;;  %v358_v23 = vsel %vm329_vm0, %v352_v19, 0.0 }
  0xb2   : > { %356 = vadd.xlane.f32.xlu0 %v355_v22 }
  0xb3   : > { %v353_v24 = vmul.f32 %v349_v20, %v349_v20  ;;  %v354_v25 = vmul.f32 %v350_v21, %v350_v21 }
  0xb5   : > { %v361_v26 = vsel %vm329_vm0, %v353_v24, 0.0  ;;  %v364_v27 = vsel %vm329_vm0, %v354_v25, 0.0 }
  0xb6   : > { %359 = vadd.xlane.f32.xlu0 %v358_v23  ;;  %362 = vadd.xlane.f32.xlu1 %v361_v26 }
  0xba   : > { %365 = vadd.xlane.f32.xlu1 %v364_v27 }
 0x13f   : > { %v357_v34 = vpop.xlane.xlu0 %356 }
 0x140   : > { %v367_v35 = vmul.f32 0.03125, %v357_v34 }
 0x142   : > { %v371_v36 = vadd.f32 1e-05, %v367_v35 }
 0x143   : > { %v363_v37 = vpop.xlane.xlu1 %362  ;;  %v360_v38 = vpop.xlane.xlu0 %359 }
 0x144   : > { %1319 = vrsqrt.f32 %v371_v36  ;;  %v369_v39 = vmul.f32 0.03125, %v363_v37  ;;  %v368_v40 = vmul.f32 0.03125, %v360_v38 }
 0x146   : > { %v373_v41 = vadd.f32 1e-05, %v369_v39  ;;  %v372_v42 = vadd.f32 1e-05, %v368_v40 }
 0x147   : > { %v366_v43 = vpop.xlane.xlu1 %365 }
 0x148   : > { %1321 = vrsqrt.f32 %v373_v41  ;;  %v370_v44 = vmul.f32 0.03125, %v366_v43 }
 0x149   : > { %1323 = vrsqrt.f32 %v372_v42 }
 0x14a   : > { %v374_v45 = vadd.f32 1e-05, %v370_v44 }
 0x14c   : > { %1325 = vrsqrt.f32 %v374_v45 }
 0x14e   : > { %v1320_v46 = vpop.eup %1319 }
 0x14f   : > { %v379_v48 = vmul.f32 %v1320_v46, %v347_v12 }
 0x151   : > { %v389_v50 = vmul.f32 %v1161_v47, %v379_v48 }
 0x152   : > { %v1322_v51 = vpop.eup %1321 }
 0x153   : > { %v1324_v52 = vpop.eup %1323  ;;  %v399_v53 = vadd.f32 %v1162_v49, %v389_v50  ;;  %v381_v54 = vmul.f32 %v1322_v51, %v349_v20 }
 0x154   : > { %v380_v55 = vmul.f32 %v1324_v52, %v348_v13 }
 0x155   : > { %1234 = vmatprep.mubr.msk.f32.mxu0 %vm329_vm0, %v399_v53  ;;  %v391_v56 = vmul.f32 %v1161_v47, %v381_v54 }
 0x156   : > { %v1326_v57 = vpop.eup %1325  ;;  %v390_v58 = vmul.f32 %v1161_v47, %v380_v55 }
 0x157   : > { %v401_v59 = vadd.f32 %v1162_v49, %v391_v56  ;;  %v382_v60 = vmul.f32 %v1326_v57, %v350_v21 }
 0x158   : > { %v400_v61 = vadd.f32 %v1162_v49, %v390_v58 }
 0x159   : > { %1237 = vmatprep.mubr.msk.f32.mxu1 %vm329_vm0, %v401_v59  ;;  %v392_v62 = vmul.f32 %v1161_v47, %v382_v60 }
 0x15a   : > { %1235 = vmatmul.mubr.msk.f32.vlgmr.msra.gmra.mrb[0].mxu0 %vm329_vm0, %v400_v61 }
 0x15b   : > { %v402_v63 = vadd.f32 %v1162_v49, %v392_v62 }
 0x15d   : > { %1238 = vmatmul.mubr.msk.f32.vlgmr.msra.gmra.mrb[0].mxu1 %vm329_vm0, %v402_v63 }
 0x22d   : > { %v1236_v1 = vpop.f32.mrb[0].mxu0 }
 0x22e   : > { %v498_v2 = vadd.f32 %v1236_v1, %v1163_v0  ;;  %v492_v3 = vpop.f32.mrb[1].mxu0 }
 0x22f   : > { %v493_v4 = vadd.f32 %v1163_v0, %v492_v3 }
 0x230   : > { %522 = vrot.lane.b32.xlu1 %v498_v2, %s1383_s18  ;;  %v1239_v5 = vpop.f32.mrb[0].mxu1  ;;  %513 = vst.msk [vmem:[%s1538_s19 + $0x8] sm:$0xff] %vm511_vm1, %v498_v2 }
 0x231   : > { %v508_v6 = vadd.f32 %v1239_v5, %v1163_v0  ;;  %520 = vrot.lane.b32.xlu0 %v493_v4, %s1383_s18  ;;  %v502_v7 = vpop.f32.mrb[1].mxu1  ;;  %512 = vst.msk [vmem:[%s1538_s19] sm:$0xff] %vm511_vm1, %v493_v4 }
 0x232   : > { %v503_v8 = vadd.f32 %v1163_v0, %v502_v7 }
 0x233   : > { %515 = vst.msk [vmem:[%s1538_s19 + $0x18] sm:$0xff] %vm511_vm1, %v508_v6 }
 0x234   : > { %526 = vrot.lane.b32.xlu1 %v508_v6, %s1383_s18  ;;  %514 = vst.msk [vmem:[%s1538_s19 + $0x10] sm:$0xff] %vm511_vm1, %v503_v8 }
 0x235   : > { %536 = vrot.lane.b32.xlu0 %v493_v4, %s1384_s24 }
 0x237   : > { %v784_v54 = vld [vmem:[%s1538_s19 + $0x8] sm:$0xff] (%p1478_p5) }
 0x238   : > { %538 = vrot.lane.b32.xlu1 %v498_v2, %s1384_s24  ;;  %v782_v53 = vld [vmem:[%s1538_s19] sm:$0xff] (%p1478_p5) }
 0x239   : > { %540 = vrot.lane.b32.xlu0 %v503_v8, %s1384_s24 }
 0x23a   : > { %v788_v56 = vld [vmem:[%s1538_s19 + $0x18] sm:$0xff] (%p1478_p5) }
 0x23b   : > { %v786_v55 = vld [vmem:[%s1538_s19 + $0x10] sm:$0xff] (%p1478_p5) }
 0x23c   : > { %542 = vrot.lane.b32.xlu1 %v508_v6, %s1384_s24  ;;  %s1552_s24 = scalar_lea.vmem [#allocation3], %s1531_s13 }
 0x23d   : > { %552 = vrot.lane.b32.xlu0 %v493_v4, %s1385_s20 }
 0x240   : > { %554 = vrot.lane.b32.xlu1 %v498_v2, %s1385_s20 }
 0x241   : > { %556 = vrot.lane.b32.xlu0 %v503_v8, %s1385_s20 }
 0x244   : > { %558 = vrot.lane.b32.xlu1 %v508_v6, %s1385_s20 }
 0x245   : > { %569 = vrot.lane.b32.xlu0 %v493_v4, %s1386_s21 }
 0x248   : > { %571 = vrot.lane.b32.xlu1 %v498_v2, %s1386_s21 }
 0x249   : > { %573 = vrot.lane.b32.xlu0 %v503_v8, %s1386_s21 }
 0x24c   : > { %575 = vrot.lane.b32.xlu1 %v508_v6, %s1386_s21 }
 0x24d   : > { %586 = vrot.lane.b32.xlu0 %v493_v4, %s1387_s22 }
 0x250   : > { %588 = vrot.lane.b32.xlu1 %v498_v2, %s1387_s22 }
 0x251   : > { %590 = vrot.lane.b32.xlu0 %v503_v8, %s1387_s22 }
 0x254   : > { %592 = vrot.lane.b32.xlu1 %v508_v6, %s1387_s22 }
 0x255   : > { %603 = vrot.lane.b32.xlu0 %v493_v4, %s1388_s23 }
 0x258   : > { %605 = vrot.lane.b32.xlu1 %v498_v2, %s1388_s23 }
 0x259   : > { %607 = vrot.lane.b32.xlu0 %v503_v8, %s1388_s23 }
 0x25c   : > { %609 = vrot.lane.b32.xlu1 %v508_v6, %s1388_s23 }
 0x25d   : > { %620 = vrot.lane.b32.xlu0 %v493_v4, %s1389_s10 }
 0x260   : > { %622 = vrot.lane.b32.xlu1 %v498_v2, %s1389_s10 }
 0x261   : > { %624 = vrot.lane.b32.xlu0 %v503_v8, %s1389_s10 }
 0x264   : > { %626 = vrot.lane.b32.xlu1 %v508_v6, %s1389_s10 }
 0x265   : > { %637 = vrot.lane.b32.xlu0 %v493_v4, %s1390_s11 }
 0x268   : > { %639 = vrot.lane.b32.xlu1 %v498_v2, %s1390_s11 }
 0x269   : > { %641 = vrot.lane.b32.xlu0 %v503_v8, %s1390_s11 }
 0x26c   : > { %643 = vrot.lane.b32.xlu1 %v508_v6, %s1390_s11 }
 0x26d   : > { %654 = vrot.lane.b32.xlu0 %v493_v4, %s1391_s26 }
 0x270   : > { %656 = vrot.lane.b32.xlu1 %v498_v2, %s1391_s26 }
 0x271   : > { %658 = vrot.lane.b32.xlu0 %v503_v8, %s1391_s26 }
 0x274   : > { %660 = vrot.lane.b32.xlu1 %v508_v6, %s1391_s26 }
 0x275   : > { %671 = vrot.lane.b32.xlu0 %v493_v4, %s1392_s14 }
 0x278   : > { %673 = vrot.lane.b32.xlu1 %v498_v2, %s1392_s14 }
 0x279   : > { %675 = vrot.lane.b32.xlu0 %v503_v8, %s1392_s14 }
 0x27c   : > { %677 = vrot.lane.b32.xlu1 %v508_v6, %s1392_s14 }
 0x27d   : > { %688 = vrot.lane.b32.xlu0 %v493_v4, %s1393_s15 }
 0x280   : > { %690 = vrot.lane.b32.xlu1 %v498_v2, %s1393_s15 }
 0x281   : > { %692 = vrot.lane.b32.xlu0 %v503_v8, %s1393_s15 }
 0x284   : > { %524 = vrot.lane.b32.xlu1 %v503_v8, %s1383_s18  ;;  %s1561_s18 = scalar_lea.vmem [#allocation4], %s1531_s13  ;;  %s1208_s13 = sshll.u32 (%p1478_p5), %s1369_s27, 5 }
 0x285   : > { %s722_s20 = sadd.s32 (%p1478_p5), %s1208_s13, %s1491_s17 }
 0x286   : > { %s1209_s21 = sshll.u32 (%p1478_p5), %s722_s20, 3 }
 0x287   : > { %s724_s10 = scalar_lea.vmem (%p1478_p5), %s1740_s5, %s1209_s21 }
 0x288   : > { %694 = vrot.lane.b32.xlu1 %v508_v6, %s1393_s15  ;;  %783 = vst [vmem:[%s724_s10] sm:$0xff] (%p1478_p5), %v782_v53  ;;  %785 = vst [vmem:[%s724_s10 + $0x8] sm:$0xff] (%p1478_p5), %v784_v54 }
 0x289   : > { %787 = vst [vmem:[%s724_s10 + $0x10] sm:$0xff] (%p1478_p5), %v786_v55  ;;  %789 = vst [vmem:[%s724_s10 + $0x18] sm:$0xff] (%p1478_p5), %v788_v56 }
 0x2a2   : > { %v523_v9 = vpop.permute.xlu1 %522 }
 0x2a3   : > { %533 = vst.msk [vmem:[%s1552_s24 + $0x8] sm:$0xff] %vm511_vm1, %v523_v9  ;;  %v521_v10 = vpop.permute.xlu0 %520 }
 0x2a4   : > { %532 = vst.msk [vmem:[%s1552_s24] sm:$0xff] %vm511_vm1, %v521_v10 }
 0x2a6   : > { %v527_v11 = vpop.permute.xlu1 %526 }
 0x2a7   : > { %535 = vst.msk [vmem:[%s1552_s24 + $0x18] sm:$0xff] %vm511_vm1, %v527_v11  ;;  %v537_v12 = vpop.permute.xlu0 %536 }
 0x2a8   : > { %548 = vst.msk [vmem:[%s1561_s18] sm:$0xff] %vm511_vm1, %v537_v12 }
 0x2aa   : > { %v539_v13 = vpop.permute.xlu1 %538 }
 0x2ab   : > { %549 = vst.msk [vmem:[%s1561_s18 + $0x8] sm:$0xff] %vm511_vm1, %v539_v13  ;;  %v541_v14 = vpop.permute.xlu0 %540 }
 0x2ac   : > { %550 = vst.msk [vmem:[%s1561_s18 + $0x10] sm:$0xff] %vm511_vm1, %v541_v14 }
 0x2ae   : > { %v543_v15 = vpop.permute.xlu1 %542 }
 0x2af   : > { %551 = vst.msk [vmem:[%s1561_s18 + $0x18] sm:$0xff] %vm511_vm1, %v543_v15  ;;  %v553_v16 = vpop.permute.xlu0 %552 }
 0x2b0   : > { %1168 = vst.msk [vmem:[%s1538_s19 + $0x20] sm:$0xff] %vm511_vm1, %v553_v16 }
 0x2b2   : > { %v555_v17 = vpop.permute.xlu1 %554 }
 0x2b3   : > { %1169 = vst.msk [vmem:[%s1538_s19 + $0x28] sm:$0xff] %vm511_vm1, %v555_v17  ;;  %v557_v18 = vpop.permute.xlu0 %556 }
 0x2b4   : > { %1170 = vst.msk [vmem:[%s1538_s19 + $0x30] sm:$0xff] %vm511_vm1, %v557_v18 }
 0x2b6   : > { %v559_v19 = vpop.permute.xlu1 %558 }
 0x2b7   : > { %1171 = vst.msk [vmem:[%s1538_s19 + $0x38] sm:$0xff] %vm511_vm1, %v559_v19  ;;  %v570_v20 = vpop.permute.xlu0 %569  ;;  %v790_v57 = vld [vmem:[%s1538_s19 + $0x20] sm:$0xff] (%p1478_p5) }
 0x2b8   : > { %1172 = vst.msk [vmem:[%s1552_s24 + $0x20] sm:$0xff] %vm511_vm1, %v570_v20  ;;  %791 = vst [vmem:[%s724_s10 + $0x40] sm:$0xff] (%p1478_p5), %v790_v57 }
 0x2ba   : > { %v572_v21 = vpop.permute.xlu1 %571  ;;  %v792_v58 = vld [vmem:[%s1538_s19 + $0x28] sm:$0xff] (%p1478_p5) }
 0x2bb   : > { %1173 = vst.msk [vmem:[%s1552_s24 + $0x28] sm:$0xff] %vm511_vm1, %v572_v21  ;;  %v574_v22 = vpop.permute.xlu0 %573  ;;  %v794_v59 = vld [vmem:[%s1538_s19 + $0x30] sm:$0xff] (%p1478_p5)  ;;  %793 = vst [vmem:[%s724_s10 + $0x48] sm:$0xff] (%p1478_p5), %v792_v58 }
 0x2bc   : > { %1174 = vst.msk [vmem:[%s1552_s24 + $0x30] sm:$0xff] %vm511_vm1, %v574_v22  ;;  %795 = vst [vmem:[%s724_s10 + $0x50] sm:$0xff] (%p1478_p5), %v794_v59 }
 0x2be   : > { %v576_v23 = vpop.permute.xlu1 %575  ;;  %v796_v60 = vld [vmem:[%s1538_s19 + $0x38] sm:$0xff] (%p1478_p5) }
 0x2bf   : > { %1175 = vst.msk [vmem:[%s1552_s24 + $0x38] sm:$0xff] %vm511_vm1, %v576_v23  ;;  %v587_v24 = vpop.permute.xlu0 %586  ;;  %797 = vst [vmem:[%s724_s10 + $0x58] sm:$0xff] (%p1478_p5), %v796_v60 }
 0x2c0   : > { %1176 = vst.msk [vmem:[%s1561_s18 + $0x20] sm:$0xff] %vm511_vm1, %v587_v24 }
 0x2c2   : > { %v589_v25 = vpop.permute.xlu1 %588 }
 0x2c3   : > { %1177 = vst.msk [vmem:[%s1561_s18 + $0x28] sm:$0xff] %vm511_vm1, %v589_v25  ;;  %v591_v26 = vpop.permute.xlu0 %590 }
 0x2c4   : > { %1178 = vst.msk [vmem:[%s1561_s18 + $0x30] sm:$0xff] %vm511_vm1, %v591_v26 }
 0x2c6   : > { %v593_v27 = vpop.permute.xlu1 %592 }
 0x2c7   : > { %1179 = vst.msk [vmem:[%s1561_s18 + $0x38] sm:$0xff] %vm511_vm1, %v593_v27  ;;  %v604_v28 = vpop.permute.xlu0 %603 }
 0x2c8   : > { %1180 = vst.msk [vmem:[%s1538_s19 + $0x40] sm:$0xff] %vm511_vm1, %v604_v28 }
 0x2ca   : > { %v606_v29 = vpop.permute.xlu1 %605 }
 0x2cb   : > { %1181 = vst.msk [vmem:[%s1538_s19 + $0x48] sm:$0xff] %vm511_vm1, %v606_v29  ;;  %v608_v30 = vpop.permute.xlu0 %607 }
 0x2cc   : > { %1182 = vst.msk [vmem:[%s1538_s19 + $0x50] sm:$0xff] %vm511_vm1, %v608_v30 }
 0x2ce   : > { %v610_v31 = vpop.permute.xlu1 %609 }
 0x2cf   : > { %1183 = vst.msk [vmem:[%s1538_s19 + $0x58] sm:$0xff] %vm511_vm1, %v610_v31  ;;  %v621_v32 = vpop.permute.xlu0 %620  ;;  %v798_v61 = vld [vmem:[%s1538_s19 + $0x40] sm:$0xff] (%p1478_p5) }
 0x2d0   : > { %1184 = vst.msk [vmem:[%s1552_s24 + $0x40] sm:$0xff] %vm511_vm1, %v621_v32  ;;  %799 = vst [vmem:[%s724_s10 + $0x80] sm:$0xff] (%p1478_p5), %v798_v61 }
 0x2d2   : > { %v623_v33 = vpop.permute.xlu1 %622  ;;  %v800_v62 = vld [vmem:[%s1538_s19 + $0x48] sm:$0xff] (%p1478_p5) }
 0x2d3   : > { %1185 = vst.msk [vmem:[%s1552_s24 + $0x48] sm:$0xff] %vm511_vm1, %v623_v33  ;;  %v625_v34 = vpop.permute.xlu0 %624  ;;  %v802_v63 = vld [vmem:[%s1538_s19 + $0x50] sm:$0xff] (%p1478_p5)  ;;  %801 = vst [vmem:[%s724_s10 + $0x88] sm:$0xff] (%p1478_p5), %v800_v62 }
 0x2d4   : > { %1186 = vst.msk [vmem:[%s1552_s24 + $0x50] sm:$0xff] %vm511_vm1, %v625_v34  ;;  %803 = vst [vmem:[%s724_s10 + $0x90] sm:$0xff] (%p1478_p5), %v802_v63 }
 0x2d6   : > { %v627_v35 = vpop.permute.xlu1 %626  ;;  %v804_v0 = vld [vmem:[%s1538_s19 + $0x58] sm:$0xff] (%p1478_p5) }
 0x2d7   : > { %1187 = vst.msk [vmem:[%s1552_s24 + $0x58] sm:$0xff] %vm511_vm1, %v627_v35  ;;  %v638_v36 = vpop.permute.xlu0 %637  ;;  %805 = vst [vmem:[%s724_s10 + $0x98] sm:$0xff] (%p1478_p5), %v804_v0 }
 0x2d8   : > { %1188 = vst.msk [vmem:[%s1561_s18 + $0x40] sm:$0xff] %vm511_vm1, %v638_v36 }
 0x2da   : > { %v640_v37 = vpop.permute.xlu1 %639 }
 0x2db   : > { %1189 = vst.msk [vmem:[%s1561_s18 + $0x48] sm:$0xff] %vm511_vm1, %v640_v37  ;;  %v642_v38 = vpop.permute.xlu0 %641 }
 0x2dc   : > { %1190 = vst.msk [vmem:[%s1561_s18 + $0x50] sm:$0xff] %vm511_vm1, %v642_v38 }
 0x2de   : > { %v644_v39 = vpop.permute.xlu1 %643 }
 0x2df   : > { %1191 = vst.msk [vmem:[%s1561_s18 + $0x58] sm:$0xff] %vm511_vm1, %v644_v39  ;;  %v655_v40 = vpop.permute.xlu0 %654 }
 0x2e0   : > { %1192 = vst.msk [vmem:[%s1538_s19 + $0x60] sm:$0xff] %vm511_vm1, %v655_v40 }
 0x2e2   : > { %v657_v41 = vpop.permute.xlu1 %656 }
 0x2e3   : > { %1193 = vst.msk [vmem:[%s1538_s19 + $0x68] sm:$0xff] %vm511_vm1, %v657_v41  ;;  %v659_v42 = vpop.permute.xlu0 %658 }
 0x2e4   : > { %1194 = vst.msk [vmem:[%s1538_s19 + $0x70] sm:$0xff] %vm511_vm1, %v659_v42 }
 0x2e6   : > { %v661_v43 = vpop.permute.xlu1 %660 }
 0x2e7   : > { %1195 = vst.msk [vmem:[%s1538_s19 + $0x78] sm:$0xff] %vm511_vm1, %v661_v43  ;;  %v672_v44 = vpop.permute.xlu0 %671  ;;  %v806_v1 = vld [vmem:[%s1538_s19 + $0x60] sm:$0xff] (%p1478_p5) }
 0x2e8   : > { %1196 = vst.msk [vmem:[%s1552_s24 + $0x60] sm:$0xff] %vm511_vm1, %v672_v44  ;;  %807 = vst [vmem:[%s724_s10 + $0xc0] sm:$0xff] (%p1478_p5), %v806_v1 }
 0x2ea   : > { %v674_v45 = vpop.permute.xlu1 %673  ;;  %v808_v2 = vld [vmem:[%s1538_s19 + $0x68] sm:$0xff] (%p1478_p5) }
 0x2eb   : > { %1197 = vst.msk [vmem:[%s1552_s24 + $0x68] sm:$0xff] %vm511_vm1, %v674_v45  ;;  %v676_v46 = vpop.permute.xlu0 %675  ;;  %v810_v3 = vld [vmem:[%s1538_s19 + $0x70] sm:$0xff] (%p1478_p5)  ;;  %809 = vst [vmem:[%s724_s10 + $0xc8] sm:$0xff] (%p1478_p5), %v808_v2 }
 0x2ec   : > { %1198 = vst.msk [vmem:[%s1552_s24 + $0x70] sm:$0xff] %vm511_vm1, %v676_v46  ;;  %811 = vst [vmem:[%s724_s10 + $0xd0] sm:$0xff] (%p1478_p5), %v810_v3 }
 0x2ee   : > { %v678_v47 = vpop.permute.xlu1 %677  ;;  %v812_v4 = vld [vmem:[%s1538_s19 + $0x78] sm:$0xff] (%p1478_p5) }
 0x2ef   : > { %1199 = vst.msk [vmem:[%s1552_s24 + $0x78] sm:$0xff] %vm511_vm1, %v678_v47  ;;  %v689_v48 = vpop.permute.xlu0 %688  ;;  %813 = vst [vmem:[%s724_s10 + $0xd8] sm:$0xff] (%p1478_p5), %v812_v4 }
 0x2f0   : > { %1200 = vst.msk [vmem:[%s1561_s18 + $0x60] sm:$0xff] %vm511_vm1, %v689_v48 }
 0x2f2   : > { %v691_v49 = vpop.permute.xlu1 %690 }
 0x2f3   : > { %1201 = vst.msk [vmem:[%s1561_s18 + $0x68] sm:$0xff] %vm511_vm1, %v691_v49  ;;  %v693_v50 = vpop.permute.xlu0 %692 }
 0x2f4   : > { %1202 = vst.msk [vmem:[%s1561_s18 + $0x70] sm:$0xff] %vm511_vm1, %v693_v50 }
 0x2f5   : > { %719 = sbr.rel (!%p1478_p5) target bundleno = 764 (0x2fc), region = 44 }
 0x2f6   : > { %v525_v51 = vpop.permute.xlu1 %524 }
 0x2f7   : > { %534 = vst.msk [vmem:[%s1552_s24 + $0x10] sm:$0xff] %vm511_vm1, %v525_v51 }
 0x2fa   : > { %v695_v52 = vpop.permute.xlu1 %694 }
 0x2fb   : > { %1203 = vst.msk [vmem:[%s1561_s18 + $0x78] sm:$0xff] %vm511_vm1, %v695_v52 }
 0x2fc PF: > { %819 = sbr.rel (!%p1478_p5) target bundleno = 776 (0x308), region = 82  ;;  %s1211_s19 = sshll.u32 (%p1478_p5), %s1369_s27, 5  ;;  %v882_v5 = vld [vmem:[%s1552_s24] sm:$0xff] (%p1478_p5)  ;;  %v884_v6 = vld [vmem:[%s1552_s24 + $0x8] sm:$0xff] (%p1478_p5)  ;;  %v888_v8 = vld [vmem:[%s1552_s24 + $0x18] sm:$0xff] (%p1478_p5) }
 0x2fd   : > { %s822_s11 = sadd.s32 (%p1478_p5), %s1211_s19, %s1491_s17  ;;  %v890_v9 = vld [vmem:[%s1552_s24 + $0x20] sm:$0xff] (%p1478_p5)  ;;  %v892_v10 = vld [vmem:[%s1552_s24 + $0x28] sm:$0xff] (%p1478_p5)  ;;  %v894_v11 = vld [vmem:[%s1552_s24 + $0x30] sm:$0xff] (%p1478_p5) }
 0x2fe   : > { %v886_v7 = vld [vmem:[%s1552_s24 + $0x10] sm:$0xff] (%p1478_p5)  ;;  %s1212_s26 = sshll.u32 (%p1478_p5), %s822_s11, 3  ;;  %v896_v12 = vld [vmem:[%s1552_s24 + $0x38] sm:$0xff] (%p1478_p5)  ;;  %v898_v13 = vld [vmem:[%s1552_s24 + $0x40] sm:$0xff] (%p1478_p5) }
 0x2ff   : > { %s824_s13 = scalar_lea.vmem (%p1478_p5), %s1741_s6, %s1212_s26  ;;  %v900_v14 = vld [vmem:[%s1552_s24 + $0x48] sm:$0xff] (%p1478_p5)  ;;  %v902_v15 = vld [vmem:[%s1552_s24 + $0x50] sm:$0xff] (%p1478_p5)  ;;  %v904_v16 = vld [vmem:[%s1552_s24 + $0x58] sm:$0xff] (%p1478_p5) }
 0x300   : > { %883 = vst [vmem:[%s824_s13] sm:$0xff] (%p1478_p5), %v882_v5  ;;  %885 = vst [vmem:[%s824_s13 + $0x8] sm:$0xff] (%p1478_p5), %v884_v6  ;;  %v906_v17 = vld [vmem:[%s1552_s24 + $0x60] sm:$0xff] (%p1478_p5)  ;;  %v908_v18 = vld [vmem:[%s1552_s24 + $0x68] sm:$0xff] (%p1478_p5) }
 0x301   : > { %887 = vst [vmem:[%s824_s13 + $0x10] sm:$0xff] (%p1478_p5), %v886_v7  ;;  %889 = vst [vmem:[%s824_s13 + $0x18] sm:$0xff] (%p1478_p5), %v888_v8  ;;  %v910_v19 = vld [vmem:[%s1552_s24 + $0x70] sm:$0xff] (%p1478_p5)  ;;  %v912_v20 = vld [vmem:[%s1552_s24 + $0x78] sm:$0xff] (%p1478_p5) }
 0x302   : > { %891 = vst [vmem:[%s824_s13 + $0x40] sm:$0xff] (%p1478_p5), %v890_v9  ;;  %893 = vst [vmem:[%s824_s13 + $0x48] sm:$0xff] (%p1478_p5), %v892_v10 }
 0x303   : > { %895 = vst [vmem:[%s824_s13 + $0x50] sm:$0xff] %v894_v11  ;;  %897 = vst [vmem:[%s824_s13 + $0x58] sm:$0xff] %v896_v12 }
 0x304   : > { %899 = vst [vmem:[%s824_s13 + $0x80] sm:$0xff] %v898_v13  ;;  %901 = vst [vmem:[%s824_s13 + $0x88] sm:$0xff] %v900_v14 }
 0x305   : > { %903 = vst [vmem:[%s824_s13 + $0x90] sm:$0xff] %v902_v15  ;;  %905 = vst [vmem:[%s824_s13 + $0x98] sm:$0xff] %v904_v16 }
 0x306   : > { %907 = vst [vmem:[%s824_s13 + $0xc0] sm:$0xff] %v906_v17  ;;  %909 = vst [vmem:[%s824_s13 + $0xc8] sm:$0xff] %v908_v18 }
 0x307   : > { %911 = vst [vmem:[%s824_s13 + $0xd0] sm:$0xff] %v910_v19  ;;  %913 = vst [vmem:[%s824_s13 + $0xd8] sm:$0xff] %v912_v20 }
 0x308 PF: > { %919 = sbr.rel (!%p1478_p5) target bundleno = 788 (0x314), region = 120  ;;  %s1214_s24 = sshll.u32 (%p1478_p5), %s1369_s27, 5  ;;  %v982_v21 = vld [vmem:[%s1561_s18] sm:$0xff] (%p1478_p5)  ;;  %v984_v22 = vld [vmem:[%s1561_s18 + $0x8] sm:$0xff] (%p1478_p5)  ;;  %v986_v23 = vld [vmem:[%s1561_s18 + $0x10] sm:$0xff] (%p1478_p5) }
 0x309   : > { %s922_s12 = sadd.s32 (%p1478_p5), %s1214_s24, %s1491_s17  ;;  %v988_v24 = vld [vmem:[%s1561_s18 + $0x18] sm:$0xff] (%p1478_p5)  ;;  %v990_v25 = vld [vmem:[%s1561_s18 + $0x20] sm:$0xff] (%p1478_p5)  ;;  %v992_v26 = vld [vmem:[%s1561_s18 + $0x28] sm:$0xff] (%p1478_p5) }
 0x30a   : > { %s1215_s20 = sshll.u32 (%p1478_p5), %s922_s12, 3  ;;  %v994_v27 = vld [vmem:[%s1561_s18 + $0x30] sm:$0xff] (%p1478_p5)  ;;  %v996_v28 = vld [vmem:[%s1561_s18 + $0x38] sm:$0xff] (%p1478_p5)  ;;  %v998_v29 = vld [vmem:[%s1561_s18 + $0x40] sm:$0xff] (%p1478_p5) }
 0x30b   : > { %s924_s23 = scalar_lea.vmem (%p1478_p5), %s1742_s7, %s1215_s20  ;;  %v1000_v30 = vld [vmem:[%s1561_s18 + $0x48] sm:$0xff] (%p1478_p5)  ;;  %v1002_v31 = vld [vmem:[%s1561_s18 + $0x50] sm:$0xff] (%p1478_p5)  ;;  %v1004_v32 = vld [vmem:[%s1561_s18 + $0x58] sm:$0xff] (%p1478_p5) }
 0x30c   : > { %983 = vst [vmem:[%s924_s23] sm:$0xff] (%p1478_p5), %v982_v21  ;;  %985 = vst [vmem:[%s924_s23 + $0x8] sm:$0xff] (%p1478_p5), %v984_v22  ;;  %v1006_v33 = vld [vmem:[%s1561_s18 + $0x60] sm:$0xff] (%p1478_p5)  ;;  %v1008_v34 = vld [vmem:[%s1561_s18 + $0x68] sm:$0xff] (%p1478_p5) }
 0x30d   : > { %987 = vst [vmem:[%s924_s23 + $0x10] sm:$0xff] (%p1478_p5), %v986_v23  ;;  %989 = vst [vmem:[%s924_s23 + $0x18] sm:$0xff] (%p1478_p5), %v988_v24  ;;  %v1010_v35 = vld [vmem:[%s1561_s18 + $0x70] sm:$0xff] (%p1478_p5)  ;;  %v1012_v36 = vld [vmem:[%s1561_s18 + $0x78] sm:$0xff] (%p1478_p5) }
 0x30e   : > { %991 = vst [vmem:[%s924_s23 + $0x40] sm:$0xff] (%p1478_p5), %v990_v25  ;;  %993 = vst [vmem:[%s924_s23 + $0x48] sm:$0xff] (%p1478_p5), %v992_v26 }
 0x30f   : > { %995 = vst [vmem:[%s924_s23 + $0x50] sm:$0xff] %v994_v27  ;;  %997 = vst [vmem:[%s924_s23 + $0x58] sm:$0xff] %v996_v28 }
 0x310   : > { %999 = vst [vmem:[%s924_s23 + $0x80] sm:$0xff] %v998_v29  ;;  %1001 = vst [vmem:[%s924_s23 + $0x88] sm:$0xff] %v1000_v30 }
 0x311   : > { %1003 = vst [vmem:[%s924_s23 + $0x90] sm:$0xff] %v1002_v31  ;;  %1005 = vst [vmem:[%s924_s23 + $0x98] sm:$0xff] %v1004_v32 }
 0x312   : > { %1007 = vst [vmem:[%s924_s23 + $0xc0] sm:$0xff] %v1006_v33  ;;  %1009 = vst [vmem:[%s924_s23 + $0xc8] sm:$0xff] %v1008_v34 }
 0x313   : > { %1011 = vst [vmem:[%s924_s23 + $0xd0] sm:$0xff] %v1010_v35  ;;  %1013 = vst [vmem:[%s924_s23 + $0xd8] sm:$0xff] %v1012_v36 }
 0x314 PF: > { %s18_s30 = sadd.s32 1, %s1381_s30   ;;  %s1744_s24 = smov %s1361_s25 }
 0x315   : > { %p15_p11 = scmp.ge.s32.totalorder %s18_s30, 6   ;;  %s1745_s25 = smov %s1489_s16 }
 0x316   : > { %s1746_s26 = smov %s1373_s28  ;;  %s1747_s27 = smov %s1377_s29 }
 0x317   : > { %s1748_s28 = smov %s1751_s8  ;;  %s1749_s29 = smov %s1755_s9 }
 0x318   :  { %17 = sbr.rel (!%p15_p11) target bundleno = 4 (0x4), region = 217 }

</bundles_post_ra>
